<compile_context>
chip_gen: v5e
topology: v5e:2x2
jax: 0.10.0
libtpu: 0.0.40
codegen_flags: <defaults>
</compile_context>

<pallas_src>
import functools

import jax
import jax.numpy as jnp
from jax.experimental import pallas as pl
from jax.experimental.pallas import tpu as pltpu


# ---------------------------------------------------------------------------
# Fused Pallas kernel: all LSTM layers + Linear head in one invocation
# ---------------------------------------------------------------------------
def fused_lstm_kernel(x_ref, *refs, num_layers, T, Bp, H, O):
    """refs = [w_ih_t, w_hh_t, bias] * num_layers + [w_lin_t, b_lin]  (inputs)
              + [out_ref]                                             (output)
    """
    n_w = 3 * num_layers + 2
    w_refs = refs[:n_w]
    out_ref = refs[n_w]

    # Lane mask for the `g` gate lanes [2H, 3H) of the (Bp, 4H) gates vreg.
    # PyTorch gate order is [i | f | g | o].  Hoisted out of all loops
    # (JAX does not CSE broadcasts).
    lane = jax.lax.broadcasted_iota(jnp.int32, (Bp, 4 * H), 1)
    g_lanes = (lane >= 2 * H) & (lane < 3 * H)

    seq_in = x_ref[...]                                    # (T*Bp, in_sz)
    h = jnp.zeros((Bp, H), jnp.float32)
    for layer in range(num_layers):
        w_ih_t = w_refs[3 * layer][...]                    # (in_sz, 4H)
        w_hh_t = w_refs[3 * layer + 1][...]                # (H, 4H)
        bias = w_refs[3 * layer + 2][...]                  # (1, 4H) = b_ih+b_hh

        # Hoisted input projection over ALL timesteps: one MXU matmul per
        # layer instead of one per timestep.  Stays in vregs (T*Bp x 4H).
        gx = jnp.dot(seq_in, w_ih_t, preferred_element_type=jnp.float32) + bias

        # h_0 = c_0 = zeros  (init_hidden in the PyTorch module)
        h = jnp.zeros((Bp, H), jnp.float32)
        c = jnp.zeros((Bp, H), jnp.float32)
        hs = []
        for t in range(T):                                 # fully unrolled
            # Sublane-aligned static slice (Bp is a multiple of 8).
            gates = gx[t * Bp:(t + 1) * Bp, :] + jnp.dot(
                h, w_hh_t, preferred_element_type=jnp.float32)
            # Single EUP push for all four gates:
            #   sigmoid(z) = 0.5 * tanh(z/2) + 0.5 ;  tanh(z) = tanh(z)
            th = jnp.tanh(jnp.where(g_lanes, gates, 0.5 * gates))
            act = jnp.where(g_lanes, th, 0.5 * th + 0.5)
            i_g = act[:, 0 * H:1 * H]
            f_g = act[:, 1 * H:2 * H]
            g_g = act[:, 2 * H:3 * H]
            o_g = act[:, 3 * H:4 * H]
            c = f_g * c + i_g * g_g
            h = o_g * jnp.tanh(c)
            if layer < num_layers - 1:
                hs.append(h)
        if layer < num_layers - 1:
            # Next layer's input sequence, rebuilt once per layer in vregs
            # (no VMEM scratch round trip, no masked per-step stores).
            seq_in = jnp.concatenate(hs, axis=0)           # (T*Bp, H)

    # Linear head on the last timestep's hidden state of the last layer.
    w_lin_t = w_refs[3 * num_layers][...]                  # (H, O)
    b_lin = w_refs[3 * num_layers + 1][...]                # (1, O)
    out_ref[...] = (
        jnp.dot(h, w_lin_t, preferred_element_type=jnp.float32) + b_lin)


# ---------------------------------------------------------------------------
# Wrapper: one pallas_call for the whole forward pass
# ---------------------------------------------------------------------------
def lstm_model_forward(params, x, input_size):
    B = x.shape[0]
    x3 = x.reshape(B, -1, input_size)                      # x.view(B, -1, input_size)
    T = x3.shape[1]
    # Pad batch to a sublane multiple so every in-kernel slice / update is
    # (8, lane)-aligned.  Padded rows are zeros and are sliced off at the end.
    Bp = max(8, ((B + 7) // 8) * 8)

    # Time-major flat rows: row t*Bp + b  ==  x[b, t, :]  (b < B), zeros else.
    x_tb = jnp.transpose(x3, (1, 0, 2))                    # (T, B, in_sz)
    x_tb = jnp.pad(x_tb, ((0, 0), (0, Bp - B), (0, 0)))
    x_tb = x_tb.reshape(T * Bp, input_size)

    lstm_layers = params["lstm"]
    num_layers = len(lstm_layers)
    H = lstm_layers[0]["w_hh"].shape[1]
    O = params["w_lin"].shape[0]

    weight_args = []
    for layer in lstm_layers:
        weight_args += [
            jnp.transpose(layer["w_ih"]),                          # (in_sz, 4H)
            jnp.transpose(layer["w_hh"]),                          # (H, 4H)
            (layer["b_ih"] + layer["b_hh"]).reshape(1, 4 * H),     # folded bias
        ]
    weight_args += [jnp.transpose(params["w_lin"]),                # (H, O)
                    params["b_lin"].reshape(1, O)]

    kernel = functools.partial(fused_lstm_kernel, num_layers=num_layers,
                               T=T, Bp=Bp, H=H, O=O)
    vmem_spec = pl.BlockSpec(memory_space=pltpu.MemorySpace.VMEM)
    out = pl.pallas_call(
        kernel,
        out_shape=jax.ShapeDtypeStruct((Bp, O), jnp.float32),
        in_specs=[vmem_spec] * (1 + len(weight_args)),
        out_specs=vmem_spec,
    )(x_tb, *weight_args)
    return jnp.squeeze(out[:B])                            # out.squeeze()


# ---------------------------------------------------------------------------
# Parameter init (PyTorch default: U(-1/sqrt(H), 1/sqrt(H)))
# ---------------------------------------------------------------------------
def init_lstm_model_params(key, input_size, hidden_size, output_size, num_layers):
    bound = float(hidden_size) ** -0.5
    layers = []
    for layer in range(num_layers):
        in_sz = input_size if layer == 0 else hidden_size
        key, k1, k2, k3, k4 = jax.random.split(key, 5)
        layers.append({
            "w_ih": jax.random.uniform(k1, (4 * hidden_size, in_sz),
                                       jnp.float32, -bound, bound),
            "w_hh": jax.random.uniform(k2, (4 * hidden_size, hidden_size),
                                       jnp.float32, -bound, bound),
            "b_ih": jax.random.uniform(k3, (4 * hidden_size,),
                                       jnp.float32, -bound, bound),
            "b_hh": jax.random.uniform(k4, (4 * hidden_size,),
                                       jnp.float32, -bound, bound),
        })
    key, k5, k6 = jax.random.split(key, 3)
    w_lin = jax.random.uniform(k5, (output_size, hidden_size),
                               jnp.float32, -bound, bound)
    b_lin = jax.random.uniform(k6, (output_size,), jnp.float32, -bound, bound)
    return {"lstm": layers, "w_lin": w_lin, "b_lin": b_lin}


# ---------------------------------------------------------------------------
# Pure-JAX reference for a correctness self-check
# ---------------------------------------------------------------------------
def lstm_model_reference(params, x, input_size):
    B = x.shape[0]
    xs = x.reshape(B, -1, input_size)
    T = xs.shape[1]
    H = params["lstm"][0]["w_hh"].shape[1]
    seq = jnp.transpose(xs, (1, 0, 2))          # (T, B, in_sz)
    h = jnp.zeros((B, H), jnp.float32)
    for layer in params["lstm"]:
        b = layer["b_ih"] + layer["b_hh"]
        h = jnp.zeros((B, H), jnp.float32)
        c = jnp.zeros((B, H), jnp.float32)
        outs = []
        for t in range(T):
            g = seq[t] @ layer["w_ih"].T + h @ layer["w_hh"].T + b
            i = jax.nn.sigmoid(g[:, 0:H])
            f = jax.nn.sigmoid(g[:, H:2 * H])
            gg = jnp.tanh(g[:, 2 * H:3 * H])
            o = jax.nn.sigmoid(g[:, 3 * H:4 * H])
            c = f * c + i * gg
            h = o * jnp.tanh(c)
            outs.append(h)
        seq = jnp.stack(outs, axis=0)
    out = h @ params["w_lin"].T + params["b_lin"]
    return jnp.squeeze(out)


# ---------------------------------------------------------------------------
if __name__ == "__main__":
    input_size = 16
    hidden_size = 32
    output_size = 1
    num_layers = 2
    seq_len = 8
    batch = 2

    key = jax.random.PRNGKey(0)
    kp, kx = jax.random.split(key)
    params = init_lstm_model_params(kp, input_size, hidden_size,
                                    output_size, num_layers)
    # Flat features, viewed inside forward() as (B, T, input_size).
    x = jax.random.normal(kx, (batch, seq_len * input_size), dtype=jnp.float32)

    forward = jax.jit(lstm_model_forward, static_argnums=2)
    out = forward(params, x, input_size)
    jax.block_until_ready(out)
    assert out.shape == (batch,)

    ref = lstm_model_reference(params, x, input_size)
    assert jnp.allclose(out, ref, atol=1e-2, rtol=1e-2), (out, ref)

    print("KERNEL_OK")
</pallas_src>

<mosaic_0001>
module attributes {stable_mosaic.version = 11 : i64} {
  func.func @fused_lstm_kernel(%arg0: memref<64x16xf32, #tpu.memory_space<vmem>>, %arg1: memref<16x128xf32, #tpu.memory_space<vmem>>, %arg2: memref<32x128xf32, #tpu.memory_space<vmem>>, %arg3: memref<1x128xf32, #tpu.memory_space<vmem>>, %arg4: memref<32x128xf32, #tpu.memory_space<vmem>>, %arg5: memref<32x128xf32, #tpu.memory_space<vmem>>, %arg6: memref<1x128xf32, #tpu.memory_space<vmem>>, %arg7: memref<32x1xf32, #tpu.memory_space<vmem>>, %arg8: memref<1x1xf32, #tpu.memory_space<vmem>>, %arg9: memref<8x1xf32, #tpu.memory_space<vmem>>) attributes {dimension_semantics = [], scalar_prefetch = 0 : i64, scratch_operands = 0 : i64, tpu.core_type = #tpu.core_type<tc>} {
    %0 = tpu.iota {dimensions = array<i32: 1>} : vector<8x128xi32>
    %c64_i32 = arith.constant 64 : i32
    %1 = vector.broadcast %c64_i32 : i32 to vector<8x128xi32>
    %2 = arith.cmpi sge, %0, %1 : vector<8x128xi32>
    %c96_i32 = arith.constant 96 : i32
    %3 = vector.broadcast %c96_i32 : i32 to vector<8x128xi32>
    %4 = arith.cmpi slt, %0, %3 : vector<8x128xi32>
    %5 = arith.andi %2, %4 : vector<8x128xi1>
    %c0 = arith.constant 0 : index
    %c0_0 = arith.constant 0 : index
    %6 = vector.load %arg0[%c0, %c0_0] : memref<64x16xf32, #tpu.memory_space<vmem>>, vector<64x16xf32>
    %c0_1 = arith.constant 0 : index
    %c0_2 = arith.constant 0 : index
    %7 = vector.load %arg1[%c0_1, %c0_2] : memref<16x128xf32, #tpu.memory_space<vmem>>, vector<16x128xf32>
    %c0_3 = arith.constant 0 : index
    %c0_4 = arith.constant 0 : index
    %8 = vector.load %arg2[%c0_3, %c0_4] : memref<32x128xf32, #tpu.memory_space<vmem>>, vector<32x128xf32>
    %c0_5 = arith.constant 0 : index
    %c0_6 = arith.constant 0 : index
    %9 = vector.load %arg3[%c0_5, %c0_6] : memref<1x128xf32, #tpu.memory_space<vmem>>, vector<1x128xf32>
    %cst = arith.constant dense<0.000000e+00> : vector<64x128xf32>
    %10 = tpu.matmul %6, %7, %cst {dimension_numbers = #tpu.dot_dimension_numbers<[1], [0], [0], [1], [0, 0, 1, 1], [], []>} : vector<64x16xf32>, vector<16x128xf32>, vector<64x128xf32> -> vector<64x128xf32>
    %11 = vector.broadcast %9 : vector<1x128xf32> to vector<64x128xf32>
    %12 = arith.addf %10, %11 : vector<64x128xf32>
    %cst_7 = arith.constant 0.000000e+00 : f32
    %13 = vector.broadcast %cst_7 : f32 to vector<8x32xf32>
    %cst_8 = arith.constant 0.000000e+00 : f32
    %14 = vector.broadcast %cst_8 : f32 to vector<8x32xf32>
    %15 = vector.extract_strided_slice %12 {offsets = [0, 0], sizes = [8, 128], strides = [1, 1]} : vector<64x128xf32> to vector<8x128xf32>
    %cst_9 = arith.constant dense<0.000000e+00> : vector<8x128xf32>
    %16 = tpu.matmul %13, %8, %cst_9 {dimension_numbers = #tpu.dot_dimension_numbers<[1], [0], [0], [1], [0, 0, 1, 1], [], []>} : vector<8x32xf32>, vector<32x128xf32>, vector<8x128xf32> -> vector<8x128xf32>
    %17 = arith.addf %15, %16 : vector<8x128xf32>
    %cst_10 = arith.constant 5.000000e-01 : f32
    %18 = vector.broadcast %cst_10 : f32 to vector<8x128xf32>
    %19 = arith.mulf %18, %17 : vector<8x128xf32>
    %20 = arith.select %5, %17, %19 : vector<8x128xi1>, vector<8x128xf32>
    %21 = math.tanh %20 : vector<8x128xf32>
    %cst_11 = arith.constant 5.000000e-01 : f32
    %22 = vector.broadcast %cst_11 : f32 to vector<8x128xf32>
    %23 = arith.mulf %22, %21 : vector<8x128xf32>
    %cst_12 = arith.constant 5.000000e-01 : f32
    %24 = vector.broadcast %cst_12 : f32 to vector<8x128xf32>
    %25 = arith.addf %23, %24 : vector<8x128xf32>
    %26 = arith.select %5, %21, %25 : vector<8x128xi1>, vector<8x128xf32>
    %27 = vector.extract_strided_slice %26 {offsets = [0, 0], sizes = [8, 32], strides = [1, 1]} : vector<8x128xf32> to vector<8x32xf32>
    %28 = vector.extract_strided_slice %26 {offsets = [0, 32], sizes = [8, 32], strides = [1, 1]} : vector<8x128xf32> to vector<8x32xf32>
    %29 = vector.extract_strided_slice %26 {offsets = [0, 64], sizes = [8, 32], strides = [1, 1]} : vector<8x128xf32> to vector<8x32xf32>
    %30 = vector.extract_strided_slice %26 {offsets = [0, 96], sizes = [8, 32], strides = [1, 1]} : vector<8x128xf32> to vector<8x32xf32>
    %31 = arith.mulf %28, %14 : vector<8x32xf32>
    %32 = arith.mulf %27, %29 : vector<8x32xf32>
    %33 = arith.addf %31, %32 : vector<8x32xf32>
    %34 = math.tanh %33 : vector<8x32xf32>
    %35 = arith.mulf %30, %34 : vector<8x32xf32>
    %36 = vector.extract_strided_slice %12 {offsets = [8, 0], sizes = [8, 128], strides = [1, 1]} : vector<64x128xf32> to vector<8x128xf32>
    %cst_13 = arith.constant dense<0.000000e+00> : vector<8x128xf32>
    %37 = tpu.matmul %35, %8, %cst_13 {dimension_numbers = #tpu.dot_dimension_numbers<[1], [0], [0], [1], [0, 0, 1, 1], [], []>} : vector<8x32xf32>, vector<32x128xf32>, vector<8x128xf32> -> vector<8x128xf32>
    %38 = arith.addf %36, %37 : vector<8x128xf32>
    %cst_14 = arith.constant 5.000000e-01 : f32
    %39 = vector.broadcast %cst_14 : f32 to vector<8x128xf32>
    %40 = arith.mulf %39, %38 : vector<8x128xf32>
    %41 = arith.select %5, %38, %40 : vector<8x128xi1>, vector<8x128xf32>
    %42 = math.tanh %41 : vector<8x128xf32>
    %cst_15 = arith.constant 5.000000e-01 : f32
    %43 = vector.broadcast %cst_15 : f32 to vector<8x128xf32>
    %44 = arith.mulf %43, %42 : vector<8x128xf32>
    %cst_16 = arith.constant 5.000000e-01 : f32
    %45 = vector.broadcast %cst_16 : f32 to vector<8x128xf32>
    %46 = arith.addf %44, %45 : vector<8x128xf32>
    %47 = arith.select %5, %42, %46 : vector<8x128xi1>, vector<8x128xf32>
    %48 = vector.extract_strided_slice %47 {offsets = [0, 0], sizes = [8, 32], strides = [1, 1]} : vector<8x128xf32> to vector<8x32xf32>
    %49 = vector.extract_strided_slice %47 {offsets = [0, 32], sizes = [8, 32], strides = [1, 1]} : vector<8x128xf32> to vector<8x32xf32>
    %50 = vector.extract_strided_slice %47 {offsets = [0, 64], sizes = [8, 32], strides = [1, 1]} : vector<8x128xf32> to vector<8x32xf32>
    %51 = vector.extract_strided_slice %47 {offsets = [0, 96], sizes = [8, 32], strides = [1, 1]} : vector<8x128xf32> to vector<8x32xf32>
    %52 = arith.mulf %49, %33 : vector<8x32xf32>
    %53 = arith.mulf %48, %50 : vector<8x32xf32>
    %54 = arith.addf %52, %53 : vector<8x32xf32>
    %55 = math.tanh %54 : vector<8x32xf32>
    %56 = arith.mulf %51, %55 : vector<8x32xf32>
    %57 = vector.extract_strided_slice %12 {offsets = [16, 0], sizes = [8, 128], strides = [1, 1]} : vector<64x128xf32> to vector<8x128xf32>
    %cst_17 = arith.constant dense<0.000000e+00> : vector<8x128xf32>
    %58 = tpu.matmul %56, %8, %cst_17 {dimension_numbers = #tpu.dot_dimension_numbers<[1], [0], [0], [1], [0, 0, 1, 1], [], []>} : vector<8x32xf32>, vector<32x128xf32>, vector<8x128xf32> -> vector<8x128xf32>
    %59 = arith.addf %57, %58 : vector<8x128xf32>
    %cst_18 = arith.constant 5.000000e-01 : f32
    %60 = vector.broadcast %cst_18 : f32 to vector<8x128xf32>
    %61 = arith.mulf %60, %59 : vector<8x128xf32>
    %62 = arith.select %5, %59, %61 : vector<8x128xi1>, vector<8x128xf32>
    %63 = math.tanh %62 : vector<8x128xf32>
    %cst_19 = arith.constant 5.000000e-01 : f32
    %64 = vector.broadcast %cst_19 : f32 to vector<8x128xf32>
    %65 = arith.mulf %64, %63 : vector<8x128xf32>
    %cst_20 = arith.constant 5.000000e-01 : f32
    %66 = vector.broadcast %cst_20 : f32 to vector<8x128xf32>
    %67 = arith.addf %65, %66 : vector<8x128xf32>
    %68 = arith.select %5, %63, %67 : vector<8x128xi1>, vector<8x128xf32>
    %69 = vector.extract_strided_slice %68 {offsets = [0, 0], sizes = [8, 32], strides = [1, 1]} : vector<8x128xf32> to vector<8x32xf32>
    %70 = vector.extract_strided_slice %68 {offsets = [0, 32], sizes = [8, 32], strides = [1, 1]} : vector<8x128xf32> to vector<8x32xf32>
    %71 = vector.extract_strided_slice %68 {offsets = [0, 64], sizes = [8, 32], strides = [1, 1]} : vector<8x128xf32> to vector<8x32xf32>
    %72 = vector.extract_strided_slice %68 {offsets = [0, 96], sizes = [8, 32], strides = [1, 1]} : vector<8x128xf32> to vector<8x32xf32>
    %73 = arith.mulf %70, %54 : vector<8x32xf32>
    %74 = arith.mulf %69, %71 : vector<8x32xf32>
    %75 = arith.addf %73, %74 : vector<8x32xf32>
    %76 = math.tanh %75 : vector<8x32xf32>
    %77 = arith.mulf %72, %76 : vector<8x32xf32>
    %78 = vector.extract_strided_slice %12 {offsets = [24, 0], sizes = [8, 128], strides = [1, 1]} : vector<64x128xf32> to vector<8x128xf32>
    %cst_21 = arith.constant dense<0.000000e+00> : vector<8x128xf32>
    %79 = tpu.matmul %77, %8, %cst_21 {dimension_numbers = #tpu.dot_dimension_numbers<[1], [0], [0], [1], [0, 0, 1, 1], [], []>} : vector<8x32xf32>, vector<32x128xf32>, vector<8x128xf32> -> vector<8x128xf32>
    %80 = arith.addf %78, %79 : vector<8x128xf32>
    %cst_22 = arith.constant 5.000000e-01 : f32
    %81 = vector.broadcast %cst_22 : f32 to vector<8x128xf32>
    %82 = arith.mulf %81, %80 : vector<8x128xf32>
    %83 = arith.select %5, %80, %82 : vector<8x128xi1>, vector<8x128xf32>
    %84 = math.tanh %83 : vector<8x128xf32>
    %cst_23 = arith.constant 5.000000e-01 : f32
    %85 = vector.broadcast %cst_23 : f32 to vector<8x128xf32>
    %86 = arith.mulf %85, %84 : vector<8x128xf32>
    %cst_24 = arith.constant 5.000000e-01 : f32
    %87 = vector.broadcast %cst_24 : f32 to vector<8x128xf32>
    %88 = arith.addf %86, %87 : vector<8x128xf32>
    %89 = arith.select %5, %84, %88 : vector<8x128xi1>, vector<8x128xf32>
    %90 = vector.extract_strided_slice %89 {offsets = [0, 0], sizes = [8, 32], strides = [1, 1]} : vector<8x128xf32> to vector<8x32xf32>
    %91 = vector.extract_strided_slice %89 {offsets = [0, 32], sizes = [8, 32], strides = [1, 1]} : vector<8x128xf32> to vector<8x32xf32>
    %92 = vector.extract_strided_slice %89 {offsets = [0, 64], sizes = [8, 32], strides = [1, 1]} : vector<8x128xf32> to vector<8x32xf32>
    %93 = vector.extract_strided_slice %89 {offsets = [0, 96], sizes = [8, 32], strides = [1, 1]} : vector<8x128xf32> to vector<8x32xf32>
    %94 = arith.mulf %91, %75 : vector<8x32xf32>
    %95 = arith.mulf %90, %92 : vector<8x32xf32>
    %96 = arith.addf %94, %95 : vector<8x32xf32>
    %97 = math.tanh %96 : vector<8x32xf32>
    %98 = arith.mulf %93, %97 : vector<8x32xf32>
    %99 = vector.extract_strided_slice %12 {offsets = [32, 0], sizes = [8, 128], strides = [1, 1]} : vector<64x128xf32> to vector<8x128xf32>
    %cst_25 = arith.constant dense<0.000000e+00> : vector<8x128xf32>
    %100 = tpu.matmul %98, %8, %cst_25 {dimension_numbers = #tpu.dot_dimension_numbers<[1], [0], [0], [1], [0, 0, 1, 1], [], []>} : vector<8x32xf32>, vector<32x128xf32>, vector<8x128xf32> -> vector<8x128xf32>
    %101 = arith.addf %99, %100 : vector<8x128xf32>
    %cst_26 = arith.constant 5.000000e-01 : f32
    %102 = vector.broadcast %cst_26 : f32 to vector<8x128xf32>
    %103 = arith.mulf %102, %101 : vector<8x128xf32>
    %104 = arith.select %5, %101, %103 : vector<8x128xi1>, vector<8x128xf32>
    %105 = math.tanh %104 : vector<8x128xf32>
    %cst_27 = arith.constant 5.000000e-01 : f32
    %106 = vector.broadcast %cst_27 : f32 to vector<8x128xf32>
    %107 = arith.mulf %106, %105 : vector<8x128xf32>
    %cst_28 = arith.constant 5.000000e-01 : f32
    %108 = vector.broadcast %cst_28 : f32 to vector<8x128xf32>
    %109 = arith.addf %107, %108 : vector<8x128xf32>
    %110 = arith.select %5, %105, %109 : vector<8x128xi1>, vector<8x128xf32>
    %111 = vector.extract_strided_slice %110 {offsets = [0, 0], sizes = [8, 32], strides = [1, 1]} : vector<8x128xf32> to vector<8x32xf32>
    %112 = vector.extract_strided_slice %110 {offsets = [0, 32], sizes = [8, 32], strides = [1, 1]} : vector<8x128xf32> to vector<8x32xf32>
    %113 = vector.extract_strided_slice %110 {offsets = [0, 64], sizes = [8, 32], strides = [1, 1]} : vector<8x128xf32> to vector<8x32xf32>
    %114 = vector.extract_strided_slice %110 {offsets = [0, 96], sizes = [8, 32], strides = [1, 1]} : vector<8x128xf32> to vector<8x32xf32>
    %115 = arith.mulf %112, %96 : vector<8x32xf32>
    %116 = arith.mulf %111, %113 : vector<8x32xf32>
    %117 = arith.addf %115, %116 : vector<8x32xf32>
    %118 = math.tanh %117 : vector<8x32xf32>
    %119 = arith.mulf %114, %118 : vector<8x32xf32>
    %120 = vector.extract_strided_slice %12 {offsets = [40, 0], sizes = [8, 128], strides = [1, 1]} : vector<64x128xf32> to vector<8x128xf32>
    %cst_29 = arith.constant dense<0.000000e+00> : vector<8x128xf32>
    %121 = tpu.matmul %119, %8, %cst_29 {dimension_numbers = #tpu.dot_dimension_numbers<[1], [0], [0], [1], [0, 0, 1, 1], [], []>} : vector<8x32xf32>, vector<32x128xf32>, vector<8x128xf32> -> vector<8x128xf32>
    %122 = arith.addf %120, %121 : vector<8x128xf32>
    %cst_30 = arith.constant 5.000000e-01 : f32
    %123 = vector.broadcast %cst_30 : f32 to vector<8x128xf32>
    %124 = arith.mulf %123, %122 : vector<8x128xf32>
    %125 = arith.select %5, %122, %124 : vector<8x128xi1>, vector<8x128xf32>
    %126 = math.tanh %125 : vector<8x128xf32>
    %cst_31 = arith.constant 5.000000e-01 : f32
    %127 = vector.broadcast %cst_31 : f32 to vector<8x128xf32>
    %128 = arith.mulf %127, %126 : vector<8x128xf32>
    %cst_32 = arith.constant 5.000000e-01 : f32
    %129 = vector.broadcast %cst_32 : f32 to vector<8x128xf32>
    %130 = arith.addf %128, %129 : vector<8x128xf32>
    %131 = arith.select %5, %126, %130 : vector<8x128xi1>, vector<8x128xf32>
    %132 = vector.extract_strided_slice %131 {offsets = [0, 0], sizes = [8, 32], strides = [1, 1]} : vector<8x128xf32> to vector<8x32xf32>
    %133 = vector.extract_strided_slice %131 {offsets = [0, 32], sizes = [8, 32], strides = [1, 1]} : vector<8x128xf32> to vector<8x32xf32>
    %134 = vector.extract_strided_slice %131 {offsets = [0, 64], sizes = [8, 32], strides = [1, 1]} : vector<8x128xf32> to vector<8x32xf32>
    %135 = vector.extract_strided_slice %131 {offsets = [0, 96], sizes = [8, 32], strides = [1, 1]} : vector<8x128xf32> to vector<8x32xf32>
    %136 = arith.mulf %133, %117 : vector<8x32xf32>
    %137 = arith.mulf %132, %134 : vector<8x32xf32>
    %138 = arith.addf %136, %137 : vector<8x32xf32>
    %139 = math.tanh %138 : vector<8x32xf32>
    %140 = arith.mulf %135, %139 : vector<8x32xf32>
    %141 = vector.extract_strided_slice %12 {offsets = [48, 0], sizes = [8, 128], strides = [1, 1]} : vector<64x128xf32> to vector<8x128xf32>
    %cst_33 = arith.constant dense<0.000000e+00> : vector<8x128xf32>
    %142 = tpu.matmul %140, %8, %cst_33 {dimension_numbers = #tpu.dot_dimension_numbers<[1], [0], [0], [1], [0, 0, 1, 1], [], []>} : vector<8x32xf32>, vector<32x128xf32>, vector<8x128xf32> -> vector<8x128xf32>
    %143 = arith.addf %141, %142 : vector<8x128xf32>
    %cst_34 = arith.constant 5.000000e-01 : f32
    %144 = vector.broadcast %cst_34 : f32 to vector<8x128xf32>
    %145 = arith.mulf %144, %143 : vector<8x128xf32>
    %146 = arith.select %5, %143, %145 : vector<8x128xi1>, vector<8x128xf32>
    %147 = math.tanh %146 : vector<8x128xf32>
    %cst_35 = arith.constant 5.000000e-01 : f32
    %148 = vector.broadcast %cst_35 : f32 to vector<8x128xf32>
    %149 = arith.mulf %148, %147 : vector<8x128xf32>
    %cst_36 = arith.constant 5.000000e-01 : f32
    %150 = vector.broadcast %cst_36 : f32 to vector<8x128xf32>
    %151 = arith.addf %149, %150 : vector<8x128xf32>
    %152 = arith.select %5, %147, %151 : vector<8x128xi1>, vector<8x128xf32>
    %153 = vector.extract_strided_slice %152 {offsets = [0, 0], sizes = [8, 32], strides = [1, 1]} : vector<8x128xf32> to vector<8x32xf32>
    %154 = vector.extract_strided_slice %152 {offsets = [0, 32], sizes = [8, 32], strides = [1, 1]} : vector<8x128xf32> to vector<8x32xf32>
    %155 = vector.extract_strided_slice %152 {offsets = [0, 64], sizes = [8, 32], strides = [1, 1]} : vector<8x128xf32> to vector<8x32xf32>
    %156 = vector.extract_strided_slice %152 {offsets = [0, 96], sizes = [8, 32], strides = [1, 1]} : vector<8x128xf32> to vector<8x32xf32>
    %157 = arith.mulf %154, %138 : vector<8x32xf32>
    %158 = arith.mulf %153, %155 : vector<8x32xf32>
    %159 = arith.addf %157, %158 : vector<8x32xf32>
    %160 = math.tanh %159 : vector<8x32xf32>
    %161 = arith.mulf %156, %160 : vector<8x32xf32>
    %162 = vector.extract_strided_slice %12 {offsets = [56, 0], sizes = [8, 128], strides = [1, 1]} : vector<64x128xf32> to vector<8x128xf32>
    %cst_37 = arith.constant dense<0.000000e+00> : vector<8x128xf32>
    %163 = tpu.matmul %161, %8, %cst_37 {dimension_numbers = #tpu.dot_dimension_numbers<[1], [0], [0], [1], [0, 0, 1, 1], [], []>} : vector<8x32xf32>, vector<32x128xf32>, vector<8x128xf32> -> vector<8x128xf32>
    %164 = arith.addf %162, %163 : vector<8x128xf32>
    %cst_38 = arith.constant 5.000000e-01 : f32
    %165 = vector.broadcast %cst_38 : f32 to vector<8x128xf32>
    %166 = arith.mulf %165, %164 : vector<8x128xf32>
    %167 = arith.select %5, %164, %166 : vector<8x128xi1>, vector<8x128xf32>
    %168 = math.tanh %167 : vector<8x128xf32>
    %cst_39 = arith.constant 5.000000e-01 : f32
    %169 = vector.broadcast %cst_39 : f32 to vector<8x128xf32>
    %170 = arith.mulf %169, %168 : vector<8x128xf32>
    %cst_40 = arith.constant 5.000000e-01 : f32
    %171 = vector.broadcast %cst_40 : f32 to vector<8x128xf32>
    %172 = arith.addf %170, %171 : vector<8x128xf32>
    %173 = arith.select %5, %168, %172 : vector<8x128xi1>, vector<8x128xf32>
    %174 = vector.extract_strided_slice %173 {offsets = [0, 0], sizes = [8, 32], strides = [1, 1]} : vector<8x128xf32> to vector<8x32xf32>
    %175 = vector.extract_strided_slice %173 {offsets = [0, 32], sizes = [8, 32], strides = [1, 1]} : vector<8x128xf32> to vector<8x32xf32>
    %176 = vector.extract_strided_slice %173 {offsets = [0, 64], sizes = [8, 32], strides = [1, 1]} : vector<8x128xf32> to vector<8x32xf32>
    %177 = vector.extract_strided_slice %173 {offsets = [0, 96], sizes = [8, 32], strides = [1, 1]} : vector<8x128xf32> to vector<8x32xf32>
    %178 = arith.mulf %175, %159 : vector<8x32xf32>
    %179 = arith.mulf %174, %176 : vector<8x32xf32>
    %180 = arith.addf %178, %179 : vector<8x32xf32>
    %181 = math.tanh %180 : vector<8x32xf32>
    %182 = arith.mulf %177, %181 : vector<8x32xf32>
    %183 = tpu.concatenate %35, %56, %77, %98, %119, %140, %161, %182 in 0 : vector<8x32xf32>, vector<8x32xf32>, vector<8x32xf32>, vector<8x32xf32>, vector<8x32xf32>, vector<8x32xf32>, vector<8x32xf32>, vector<8x32xf32> -> vector<64x32xf32>
    %c0_41 = arith.constant 0 : index
    %c0_42 = arith.constant 0 : index
    %184 = vector.load %arg4[%c0_41, %c0_42] : memref<32x128xf32, #tpu.memory_space<vmem>>, vector<32x128xf32>
    %c0_43 = arith.constant 0 : index
    %c0_44 = arith.constant 0 : index
    %185 = vector.load %arg5[%c0_43, %c0_44] : memref<32x128xf32, #tpu.memory_space<vmem>>, vector<32x128xf32>
    %c0_45 = arith.constant 0 : index
    %c0_46 = arith.constant 0 : index
    %186 = vector.load %arg6[%c0_45, %c0_46] : memref<1x128xf32, #tpu.memory_space<vmem>>, vector<1x128xf32>
    %cst_47 = arith.constant dense<0.000000e+00> : vector<64x128xf32>
    %187 = tpu.matmul %183, %184, %cst_47 {dimension_numbers = #tpu.dot_dimension_numbers<[1], [0], [0], [1], [0, 0, 1, 1], [], []>} : vector<64x32xf32>, vector<32x128xf32>, vector<64x128xf32> -> vector<64x128xf32>
    %188 = vector.broadcast %186 : vector<1x128xf32> to vector<64x128xf32>
    %189 = arith.addf %187, %188 : vector<64x128xf32>
    %cst_48 = arith.constant 0.000000e+00 : f32
    %190 = vector.broadcast %cst_48 : f32 to vector<8x32xf32>
    %cst_49 = arith.constant 0.000000e+00 : f32
    %191 = vector.broadcast %cst_49 : f32 to vector<8x32xf32>
    %192 = vector.extract_strided_slice %189 {offsets = [0, 0], sizes = [8, 128], strides = [1, 1]} : vector<64x128xf32> to vector<8x128xf32>
    %cst_50 = arith.constant dense<0.000000e+00> : vector<8x128xf32>
    %193 = tpu.matmul %190, %185, %cst_50 {dimension_numbers = #tpu.dot_dimension_numbers<[1], [0], [0], [1], [0, 0, 1, 1], [], []>} : vector<8x32xf32>, vector<32x128xf32>, vector<8x128xf32> -> vector<8x128xf32>
    %194 = arith.addf %192, %193 : vector<8x128xf32>
    %cst_51 = arith.constant 5.000000e-01 : f32
    %195 = vector.broadcast %cst_51 : f32 to vector<8x128xf32>
    %196 = arith.mulf %195, %194 : vector<8x128xf32>
    %197 = arith.select %5, %194, %196 : vector<8x128xi1>, vector<8x128xf32>
    %198 = math.tanh %197 : vector<8x128xf32>
    %cst_52 = arith.constant 5.000000e-01 : f32
    %199 = vector.broadcast %cst_52 : f32 to vector<8x128xf32>
    %200 = arith.mulf %199, %198 : vector<8x128xf32>
    %cst_53 = arith.constant 5.000000e-01 : f32
    %201 = vector.broadcast %cst_53 : f32 to vector<8x128xf32>
    %202 = arith.addf %200, %201 : vector<8x128xf32>
    %203 = arith.select %5, %198, %202 : vector<8x128xi1>, vector<8x128xf32>
    %204 = vector.extract_strided_slice %203 {offsets = [0, 0], sizes = [8, 32], strides = [1, 1]} : vector<8x128xf32> to vector<8x32xf32>
    %205 = vector.extract_strided_slice %203 {offsets = [0, 32], sizes = [8, 32], strides = [1, 1]} : vector<8x128xf32> to vector<8x32xf32>
    %206 = vector.extract_strided_slice %203 {offsets = [0, 64], sizes = [8, 32], strides = [1, 1]} : vector<8x128xf32> to vector<8x32xf32>
    %207 = vector.extract_strided_slice %203 {offsets = [0, 96], sizes = [8, 32], strides = [1, 1]} : vector<8x128xf32> to vector<8x32xf32>
    %208 = arith.mulf %205, %191 : vector<8x32xf32>
    %209 = arith.mulf %204, %206 : vector<8x32xf32>
    %210 = arith.addf %208, %209 : vector<8x32xf32>
    %211 = math.tanh %210 : vector<8x32xf32>
    %212 = arith.mulf %207, %211 : vector<8x32xf32>
    %213 = vector.extract_strided_slice %189 {offsets = [8, 0], sizes = [8, 128], strides = [1, 1]} : vector<64x128xf32> to vector<8x128xf32>
    %cst_54 = arith.constant dense<0.000000e+00> : vector<8x128xf32>
    %214 = tpu.matmul %212, %185, %cst_54 {dimension_numbers = #tpu.dot_dimension_numbers<[1], [0], [0], [1], [0, 0, 1, 1], [], []>} : vector<8x32xf32>, vector<32x128xf32>, vector<8x128xf32> -> vector<8x128xf32>
    %215 = arith.addf %213, %214 : vector<8x128xf32>
    %cst_55 = arith.constant 5.000000e-01 : f32
    %216 = vector.broadcast %cst_55 : f32 to vector<8x128xf32>
    %217 = arith.mulf %216, %215 : vector<8x128xf32>
    %218 = arith.select %5, %215, %217 : vector<8x128xi1>, vector<8x128xf32>
    %219 = math.tanh %218 : vector<8x128xf32>
    %cst_56 = arith.constant 5.000000e-01 : f32
    %220 = vector.broadcast %cst_56 : f32 to vector<8x128xf32>
    %221 = arith.mulf %220, %219 : vector<8x128xf32>
    %cst_57 = arith.constant 5.000000e-01 : f32
    %222 = vector.broadcast %cst_57 : f32 to vector<8x128xf32>
    %223 = arith.addf %221, %222 : vector<8x128xf32>
    %224 = arith.select %5, %219, %223 : vector<8x128xi1>, vector<8x128xf32>
    %225 = vector.extract_strided_slice %224 {offsets = [0, 0], sizes = [8, 32], strides = [1, 1]} : vector<8x128xf32> to vector<8x32xf32>
    %226 = vector.extract_strided_slice %224 {offsets = [0, 32], sizes = [8, 32], strides = [1, 1]} : vector<8x128xf32> to vector<8x32xf32>
    %227 = vector.extract_strided_slice %224 {offsets = [0, 64], sizes = [8, 32], strides = [1, 1]} : vector<8x128xf32> to vector<8x32xf32>
    %228 = vector.extract_strided_slice %224 {offsets = [0, 96], sizes = [8, 32], strides = [1, 1]} : vector<8x128xf32> to vector<8x32xf32>
    %229 = arith.mulf %226, %210 : vector<8x32xf32>
    %230 = arith.mulf %225, %227 : vector<8x32xf32>
    %231 = arith.addf %229, %230 : vector<8x32xf32>
    %232 = math.tanh %231 : vector<8x32xf32>
    %233 = arith.mulf %228, %232 : vector<8x32xf32>
    %234 = vector.extract_strided_slice %189 {offsets = [16, 0], sizes = [8, 128], strides = [1, 1]} : vector<64x128xf32> to vector<8x128xf32>
    %cst_58 = arith.constant dense<0.000000e+00> : vector<8x128xf32>
    %235 = tpu.matmul %233, %185, %cst_58 {dimension_numbers = #tpu.dot_dimension_numbers<[1], [0], [0], [1], [0, 0, 1, 1], [], []>} : vector<8x32xf32>, vector<32x128xf32>, vector<8x128xf32> -> vector<8x128xf32>
    %236 = arith.addf %234, %235 : vector<8x128xf32>
    %cst_59 = arith.constant 5.000000e-01 : f32
    %237 = vector.broadcast %cst_59 : f32 to vector<8x128xf32>
    %238 = arith.mulf %237, %236 : vector<8x128xf32>
    %239 = arith.select %5, %236, %238 : vector<8x128xi1>, vector<8x128xf32>
    %240 = math.tanh %239 : vector<8x128xf32>
    %cst_60 = arith.constant 5.000000e-01 : f32
    %241 = vector.broadcast %cst_60 : f32 to vector<8x128xf32>
    %242 = arith.mulf %241, %240 : vector<8x128xf32>
    %cst_61 = arith.constant 5.000000e-01 : f32
    %243 = vector.broadcast %cst_61 : f32 to vector<8x128xf32>
    %244 = arith.addf %242, %243 : vector<8x128xf32>
    %245 = arith.select %5, %240, %244 : vector<8x128xi1>, vector<8x128xf32>
    %246 = vector.extract_strided_slice %245 {offsets = [0, 0], sizes = [8, 32], strides = [1, 1]} : vector<8x128xf32> to vector<8x32xf32>
    %247 = vector.extract_strided_slice %245 {offsets = [0, 32], sizes = [8, 32], strides = [1, 1]} : vector<8x128xf32> to vector<8x32xf32>
    %248 = vector.extract_strided_slice %245 {offsets = [0, 64], sizes = [8, 32], strides = [1, 1]} : vector<8x128xf32> to vector<8x32xf32>
    %249 = vector.extract_strided_slice %245 {offsets = [0, 96], sizes = [8, 32], strides = [1, 1]} : vector<8x128xf32> to vector<8x32xf32>
    %250 = arith.mulf %247, %231 : vector<8x32xf32>
    %251 = arith.mulf %246, %248 : vector<8x32xf32>
    %252 = arith.addf %250, %251 : vector<8x32xf32>
    %253 = math.tanh %252 : vector<8x32xf32>
    %254 = arith.mulf %249, %253 : vector<8x32xf32>
    %255 = vector.extract_strided_slice %189 {offsets = [24, 0], sizes = [8, 128], strides = [1, 1]} : vector<64x128xf32> to vector<8x128xf32>
    %cst_62 = arith.constant dense<0.000000e+00> : vector<8x128xf32>
    %256 = tpu.matmul %254, %185, %cst_62 {dimension_numbers = #tpu.dot_dimension_numbers<[1], [0], [0], [1], [0, 0, 1, 1], [], []>} : vector<8x32xf32>, vector<32x128xf32>, vector<8x128xf32> -> vector<8x128xf32>
    %257 = arith.addf %255, %256 : vector<8x128xf32>
    %cst_63 = arith.constant 5.000000e-01 : f32
    %258 = vector.broadcast %cst_63 : f32 to vector<8x128xf32>
    %259 = arith.mulf %258, %257 : vector<8x128xf32>
    %260 = arith.select %5, %257, %259 : vector<8x128xi1>, vector<8x128xf32>
    %261 = math.tanh %260 : vector<8x128xf32>
    %cst_64 = arith.constant 5.000000e-01 : f32
    %262 = vector.broadcast %cst_64 : f32 to vector<8x128xf32>
    %263 = arith.mulf %262, %261 : vector<8x128xf32>
    %cst_65 = arith.constant 5.000000e-01 : f32
    %264 = vector.broadcast %cst_65 : f32 to vector<8x128xf32>
    %265 = arith.addf %263, %264 : vector<8x128xf32>
    %266 = arith.select %5, %261, %265 : vector<8x128xi1>, vector<8x128xf32>
    %267 = vector.extract_strided_slice %266 {offsets = [0, 0], sizes = [8, 32], strides = [1, 1]} : vector<8x128xf32> to vector<8x32xf32>
    %268 = vector.extract_strided_slice %266 {offsets = [0, 32], sizes = [8, 32], strides = [1, 1]} : vector<8x128xf32> to vector<8x32xf32>
    %269 = vector.extract_strided_slice %266 {offsets = [0, 64], sizes = [8, 32], strides = [1, 1]} : vector<8x128xf32> to vector<8x32xf32>
    %270 = vector.extract_strided_slice %266 {offsets = [0, 96], sizes = [8, 32], strides = [1, 1]} : vector<8x128xf32> to vector<8x32xf32>
    %271 = arith.mulf %268, %252 : vector<8x32xf32>
    %272 = arith.mulf %267, %269 : vector<8x32xf32>
    %273 = arith.addf %271, %272 : vector<8x32xf32>
    %274 = math.tanh %273 : vector<8x32xf32>
    %275 = arith.mulf %270, %274 : vector<8x32xf32>
    %276 = vector.extract_strided_slice %189 {offsets = [32, 0], sizes = [8, 128], strides = [1, 1]} : vector<64x128xf32> to vector<8x128xf32>
    %cst_66 = arith.constant dense<0.000000e+00> : vector<8x128xf32>
    %277 = tpu.matmul %275, %185, %cst_66 {dimension_numbers = #tpu.dot_dimension_numbers<[1], [0], [0], [1], [0, 0, 1, 1], [], []>} : vector<8x32xf32>, vector<32x128xf32>, vector<8x128xf32> -> vector<8x128xf32>
    %278 = arith.addf %276, %277 : vector<8x128xf32>
    %cst_67 = arith.constant 5.000000e-01 : f32
    %279 = vector.broadcast %cst_67 : f32 to vector<8x128xf32>
    %280 = arith.mulf %279, %278 : vector<8x128xf32>
    %281 = arith.select %5, %278, %280 : vector<8x128xi1>, vector<8x128xf32>
    %282 = math.tanh %281 : vector<8x128xf32>
    %cst_68 = arith.constant 5.000000e-01 : f32
    %283 = vector.broadcast %cst_68 : f32 to vector<8x128xf32>
    %284 = arith.mulf %283, %282 : vector<8x128xf32>
    %cst_69 = arith.constant 5.000000e-01 : f32
    %285 = vector.broadcast %cst_69 : f32 to vector<8x128xf32>
    %286 = arith.addf %284, %285 : vector<8x128xf32>
    %287 = arith.select %5, %282, %286 : vector<8x128xi1>, vector<8x128xf32>
    %288 = vector.extract_strided_slice %287 {offsets = [0, 0], sizes = [8, 32], strides = [1, 1]} : vector<8x128xf32> to vector<8x32xf32>
    %289 = vector.extract_strided_slice %287 {offsets = [0, 32], sizes = [8, 32], strides = [1, 1]} : vector<8x128xf32> to vector<8x32xf32>
    %290 = vector.extract_strided_slice %287 {offsets = [0, 64], sizes = [8, 32], strides = [1, 1]} : vector<8x128xf32> to vector<8x32xf32>
    %291 = vector.extract_strided_slice %287 {offsets = [0, 96], sizes = [8, 32], strides = [1, 1]} : vector<8x128xf32> to vector<8x32xf32>
    %292 = arith.mulf %289, %273 : vector<8x32xf32>
    %293 = arith.mulf %288, %290 : vector<8x32xf32>
    %294 = arith.addf %292, %293 : vector<8x32xf32>
    %295 = math.tanh %294 : vector<8x32xf32>
    %296 = arith.mulf %291, %295 : vector<8x32xf32>
    %297 = vector.extract_strided_slice %189 {offsets = [40, 0], sizes = [8, 128], strides = [1, 1]} : vector<64x128xf32> to vector<8x128xf32>
    %cst_70 = arith.constant dense<0.000000e+00> : vector<8x128xf32>
    %298 = tpu.matmul %296, %185, %cst_70 {dimension_numbers = #tpu.dot_dimension_numbers<[1], [0], [0], [1], [0, 0, 1, 1], [], []>} : vector<8x32xf32>, vector<32x128xf32>, vector<8x128xf32> -> vector<8x128xf32>
    %299 = arith.addf %297, %298 : vector<8x128xf32>
    %cst_71 = arith.constant 5.000000e-01 : f32
    %300 = vector.broadcast %cst_71 : f32 to vector<8x128xf32>
    %301 = arith.mulf %300, %299 : vector<8x128xf32>
    %302 = arith.select %5, %299, %301 : vector<8x128xi1>, vector<8x128xf32>
    %303 = math.tanh %302 : vector<8x128xf32>
    %cst_72 = arith.constant 5.000000e-01 : f32
    %304 = vector.broadcast %cst_72 : f32 to vector<8x128xf32>
    %305 = arith.mulf %304, %303 : vector<8x128xf32>
    %cst_73 = arith.constant 5.000000e-01 : f32
    %306 = vector.broadcast %cst_73 : f32 to vector<8x128xf32>
    %307 = arith.addf %305, %306 : vector<8x128xf32>
    %308 = arith.select %5, %303, %307 : vector<8x128xi1>, vector<8x128xf32>
    %309 = vector.extract_strided_slice %308 {offsets = [0, 0], sizes = [8, 32], strides = [1, 1]} : vector<8x128xf32> to vector<8x32xf32>
    %310 = vector.extract_strided_slice %308 {offsets = [0, 32], sizes = [8, 32], strides = [1, 1]} : vector<8x128xf32> to vector<8x32xf32>
    %311 = vector.extract_strided_slice %308 {offsets = [0, 64], sizes = [8, 32], strides = [1, 1]} : vector<8x128xf32> to vector<8x32xf32>
    %312 = vector.extract_strided_slice %308 {offsets = [0, 96], sizes = [8, 32], strides = [1, 1]} : vector<8x128xf32> to vector<8x32xf32>
    %313 = arith.mulf %310, %294 : vector<8x32xf32>
    %314 = arith.mulf %309, %311 : vector<8x32xf32>
    %315 = arith.addf %313, %314 : vector<8x32xf32>
    %316 = math.tanh %315 : vector<8x32xf32>
    %317 = arith.mulf %312, %316 : vector<8x32xf32>
    %318 = vector.extract_strided_slice %189 {offsets = [48, 0], sizes = [8, 128], strides = [1, 1]} : vector<64x128xf32> to vector<8x128xf32>
    %cst_74 = arith.constant dense<0.000000e+00> : vector<8x128xf32>
    %319 = tpu.matmul %317, %185, %cst_74 {dimension_numbers = #tpu.dot_dimension_numbers<[1], [0], [0], [1], [0, 0, 1, 1], [], []>} : vector<8x32xf32>, vector<32x128xf32>, vector<8x128xf32> -> vector<8x128xf32>
    %320 = arith.addf %318, %319 : vector<8x128xf32>
    %cst_75 = arith.constant 5.000000e-01 : f32
    %321 = vector.broadcast %cst_75 : f32 to vector<8x128xf32>
    %322 = arith.mulf %321, %320 : vector<8x128xf32>
    %323 = arith.select %5, %320, %322 : vector<8x128xi1>, vector<8x128xf32>
    %324 = math.tanh %323 : vector<8x128xf32>
    %cst_76 = arith.constant 5.000000e-01 : f32
    %325 = vector.broadcast %cst_76 : f32 to vector<8x128xf32>
    %326 = arith.mulf %325, %324 : vector<8x128xf32>
    %cst_77 = arith.constant 5.000000e-01 : f32
    %327 = vector.broadcast %cst_77 : f32 to vector<8x128xf32>
    %328 = arith.addf %326, %327 : vector<8x128xf32>
    %329 = arith.select %5, %324, %328 : vector<8x128xi1>, vector<8x128xf32>
    %330 = vector.extract_strided_slice %329 {offsets = [0, 0], sizes = [8, 32], strides = [1, 1]} : vector<8x128xf32> to vector<8x32xf32>
    %331 = vector.extract_strided_slice %329 {offsets = [0, 32], sizes = [8, 32], strides = [1, 1]} : vector<8x128xf32> to vector<8x32xf32>
    %332 = vector.extract_strided_slice %329 {offsets = [0, 64], sizes = [8, 32], strides = [1, 1]} : vector<8x128xf32> to vector<8x32xf32>
    %333 = vector.extract_strided_slice %329 {offsets = [0, 96], sizes = [8, 32], strides = [1, 1]} : vector<8x128xf32> to vector<8x32xf32>
    %334 = arith.mulf %331, %315 : vector<8x32xf32>
    %335 = arith.mulf %330, %332 : vector<8x32xf32>
    %336 = arith.addf %334, %335 : vector<8x32xf32>
    %337 = math.tanh %336 : vector<8x32xf32>
    %338 = arith.mulf %333, %337 : vector<8x32xf32>
    %339 = vector.extract_strided_slice %189 {offsets = [56, 0], sizes = [8, 128], strides = [1, 1]} : vector<64x128xf32> to vector<8x128xf32>
    %cst_78 = arith.constant dense<0.000000e+00> : vector<8x128xf32>
    %340 = tpu.matmul %338, %185, %cst_78 {dimension_numbers = #tpu.dot_dimension_numbers<[1], [0], [0], [1], [0, 0, 1, 1], [], []>} : vector<8x32xf32>, vector<32x128xf32>, vector<8x128xf32> -> vector<8x128xf32>
    %341 = arith.addf %339, %340 : vector<8x128xf32>
    %cst_79 = arith.constant 5.000000e-01 : f32
    %342 = vector.broadcast %cst_79 : f32 to vector<8x128xf32>
    %343 = arith.mulf %342, %341 : vector<8x128xf32>
    %344 = arith.select %5, %341, %343 : vector<8x128xi1>, vector<8x128xf32>
    %345 = math.tanh %344 : vector<8x128xf32>
    %cst_80 = arith.constant 5.000000e-01 : f32
    %346 = vector.broadcast %cst_80 : f32 to vector<8x128xf32>
    %347 = arith.mulf %346, %345 : vector<8x128xf32>
    %cst_81 = arith.constant 5.000000e-01 : f32
    %348 = vector.broadcast %cst_81 : f32 to vector<8x128xf32>
    %349 = arith.addf %347, %348 : vector<8x128xf32>
    %350 = arith.select %5, %345, %349 : vector<8x128xi1>, vector<8x128xf32>
    %351 = vector.extract_strided_slice %350 {offsets = [0, 0], sizes = [8, 32], strides = [1, 1]} : vector<8x128xf32> to vector<8x32xf32>
    %352 = vector.extract_strided_slice %350 {offsets = [0, 32], sizes = [8, 32], strides = [1, 1]} : vector<8x128xf32> to vector<8x32xf32>
    %353 = vector.extract_strided_slice %350 {offsets = [0, 64], sizes = [8, 32], strides = [1, 1]} : vector<8x128xf32> to vector<8x32xf32>
    %354 = vector.extract_strided_slice %350 {offsets = [0, 96], sizes = [8, 32], strides = [1, 1]} : vector<8x128xf32> to vector<8x32xf32>
    %355 = arith.mulf %352, %336 : vector<8x32xf32>
    %356 = arith.mulf %351, %353 : vector<8x32xf32>
    %357 = arith.addf %355, %356 : vector<8x32xf32>
    %358 = math.tanh %357 : vector<8x32xf32>
    %359 = arith.mulf %354, %358 : vector<8x32xf32>
    %c0_82 = arith.constant 0 : index
    %c0_83 = arith.constant 0 : index
    %360 = vector.load %arg7[%c0_82, %c0_83] : memref<32x1xf32, #tpu.memory_space<vmem>>, vector<32x1xf32>
    %c0_84 = arith.constant 0 : index
    %c0_85 = arith.constant 0 : index
    %361 = vector.load %arg8[%c0_84, %c0_85] : memref<1x1xf32, #tpu.memory_space<vmem>>, vector<1x1xf32>
    %cst_86 = arith.constant dense<0.000000e+00> : vector<8x1xf32>
    %362 = tpu.matmul %359, %360, %cst_86 {dimension_numbers = #tpu.dot_dimension_numbers<[1], [0], [0], [1], [0, 0, 1, 1], [], []>} : vector<8x32xf32>, vector<32x1xf32>, vector<8x1xf32> -> vector<8x1xf32>
    %363 = vector.broadcast %361 : vector<1x1xf32> to vector<8x1xf32>
    %364 = arith.addf %362, %363 : vector<8x1xf32>
    %c0_87 = arith.constant 0 : index
    %c0_88 = arith.constant 0 : index
    %365 = vector.load %arg9[%c0_87, %c0_88] : memref<8x1xf32, #tpu.memory_space<vmem>>, vector<8x1xf32>
    tpu.vector_store %arg9[%c0_87, %c0_88], %364 {strides = array<i32>} : memref<8x1xf32, #tpu.memory_space<vmem>>, vector<8x1xf32>,
    return
  }
}

</mosaic_0001>

<bundles_post_ra>
// kernel: lstm_model_forward.1
= control target key start
LH: loop header
LB: loop body
LE: loop exit
PB: predicated region body
PF: predicated region fallthrough
CT: control target
= control target key end

     0   :  { %vm57_vm0 = vcmask 130048   ;;  %v1099_v7 = vmov 0.0   ;;  %v34_v8 = vlaneseq  ;;  %s1101_s23 = smov 32   ;;  %vm123_vm4 = vcmask 261120   ;;  %s1517_s2 = inlined_call_operand.vmem [shape: f32[32,128], index: 2, kind: input, shape index: {}]   ;;  %s1518_s1 = inlined_call_operand.vmem [shape: f32[16,128], index: 1, kind: input, shape index: {}]   ;;  %s1519_s0 = inlined_call_operand.vmem [shape: f32[64,16], index: 0, kind: input, shape index: {}]   ;;  %s1520_s3 = inlined_call_operand.vmem [shape: f32[1,128], index: 3, kind: input, shape index: {}]   ;;  %s1521_s4 = inlined_call_operand.vmem [shape: f32[32,128], index: 4, kind: input, shape index: {}]   ;;  %s1522_s6 = inlined_call_operand.vmem [shape: f32[1,128], index: 6, kind: input, shape index: {}]   ;;  %s1523_s5 = inlined_call_operand.vmem [shape: f32[32,128], index: 5, kind: input, shape index: {}]   ;;  %s1524_s7 = inlined_call_operand.vmem [shape: f32[32,1], index: 7, kind: input, shape index: {}]   ;;  %s1525_s8 = inlined_call_operand.<no memory space> [shape: f32[1,1], index: 8, kind: input, shape index: {}]   ;;  %s1526_s9 = inlined_call_operand.vmem [shape: f32[8,1], index: 9, kind: output, shape index: {}]  }
   0x1   :  { %v1155_v0 = vld [vmem:[%s1517_s2 + $0x18] sm:$0xff]  ;;  %v48_v1 = vld [vmem:[%s1518_s1 + $0x8] sm:$0xff]  ;;  %v1163_v2 = vld [vmem:[%s1517_s2 + $0x10] sm:$0xff]  ;;  %vm992_vm5 = vcmask 7168  }
   0x2   :  { %139 = vmatpush.msra.mxu1 %v1155_v0  ;;  %96 = vmatpush.msra.mxu0 %v48_v1  ;;  %v47_v3 = vld [vmem:[%s1518_s1] sm:$0xff]  ;;  %v1175_v5 = vld [vmem:[%s1517_s2 + $0x8] sm:$0xff]  ;;  %v35_v10 = vand.u32 127, %v34_v8  ;;  %v517_v28 = vld [vmem:[%s1521_s4 + $0x18] sm:$0xff] }
   0x3   :  { %v39_v4 = vld [vmem:[%s1519_s0] sm:$0xff]  ;;  %188 = vmatpush.msra.mxu2 %v1155_v0  ;;  %v516_v29 = vld [vmem:[%s1521_s4 + $0x10] sm:$0xff]  ;;  %543 = vmatpush.msra.mxu3 %v517_v28  ;;  %v515_v30 = vld [vmem:[%s1521_s4 + $0x8] sm:$0xff] }
   0x4   :  { %140 = vmatpush.msra.mxu1 %v1163_v2  ;;  %97 = vmatpush.msra.mxu0 %v47_v3  ;;  %v1183_v6 = vld [vmem:[%s1517_s2] sm:$0xff]  ;;  %vm36_vm1 = vcmp.ge.s32.totalorder %v35_v10, 64  ;;  %vm37_vm2 = vcmp.lt.s32.totalorder %v35_v10, 96  ;;  %v40_v34 = vld [vmem:[%s1519_s0 + $0x8] sm:$0xff]  ;;  %v41_v54 = vld [vmem:[%s1519_s0 + $0x10] sm:$0xff] }
   0x5   :  { %998 = vmatmul.msk.f32.vlgmr.msra.gmra.mxu0 %vm57_vm0, %v39_v4  ;;  %189 = vmatpush.msra.mxu2 %v1163_v2  ;;  %v1210_v9 = vld [vmem:[%s1520_s3] ss:$0 sm:$0xff]  ;;  %vm1213_vm3 = vmand %vm36_vm1, %vm37_vm2  ;;  %s1100_s3 = smov 64   ;;  %v42_v10 = vld [vmem:[%s1519_s0 + $0x18] sm:$0xff] }
   0x6   :  { %141 = vmatpush.msra.mxu1 %v1175_v5  ;;  %384 = vmatpush.msrb.mxu0 %v1155_v0  ;;  %v514_v31 = vld [vmem:[%s1521_s4] sm:$0xff]  ;;  %v961_v15 = vld [vmem:[%s1524_s7 + $0x10] sm:$0xff] }
   0x7   :  { %190 = vmatpush.msra.mxu2 %v1175_v5  ;;  %544 = vmatpush.msra.mxu3 %v516_v29 }
   0x8   :  { %142 = vmatpush.msra.mxu1 %v1183_v6  ;;  %385 = vmatpush.msrb.mxu0 %v1163_v2 }
   0x9   :  { %143 = vmatmul.f32.vlgmr.msra.gmra.mxu1 %v1099_v7  ;;  %191 = vmatpush.msra.mxu2 %v1183_v6 }
   0xa   :  { %286 = vmatpush.msrb.mxu1 %v1155_v0  ;;  %386 = vmatpush.msrb.mxu0 %v1175_v5 }
   0xb   :  { %237 = vmatpush.msrb.mxu2 %v1155_v0  ;;  %545 = vmatpush.msra.mxu3 %v515_v30 }
   0xc   :  { %287 = vmatpush.msrb.mxu1 %v1163_v2  ;;  %387 = vmatpush.msrb.mxu0 %v1183_v6 }
   0xd   :  { %238 = vmatpush.msrb.mxu2 %v1163_v2  ;;  %546 = vmatpush.msra.mxu3 %v514_v31 }
   0xe   :  { %288 = vmatpush.msrb.mxu1 %v1175_v5  ;;  %999 = vmatmul.msk.f32.gmra.mxu0 %vm57_vm0, %v40_v34 }
   0xf   :  { %239 = vmatpush.msrb.mxu2 %v1175_v5 }
  0x10   :  { %289 = vmatpush.msrb.mxu1 %v1183_v6 }
  0x11   :  { %240 = vmatpush.msrb.mxu2 %v1183_v6 }
  0x12   :  { %433 = vmatpush.msra.mxu1 %v1155_v0 }
  0x14   :  { %434 = vmatpush.msra.mxu1 %v1163_v2 }
  0x16   :  { %435 = vmatpush.msra.mxu1 %v1175_v5  ;;  %1000 = vmatmul.msk.f32.gmra.mxu0 %vm57_vm0, %v41_v54 }
  0x18   :  { %436 = vmatpush.msra.mxu1 %v1183_v6 }
  0x1e   :  { %1001 = vmatmul.msk.f32.gmra.mxu0 %vm57_vm0, %v42_v10 }
  0x82   :  { %v99_v11 = vpop.f32.mrf.mxu0 }
  0x83   :  { %v100_v12 = vadd.f32 %v1210_v9, %v99_v11 }
  0x86   :  { %v144_v13 = vpop.f32.mrf.mxu1 }
  0x87   :  { %v147_v14 = vadd.f32 %v144_v13, %v100_v12 }
  0x89   :  { %v148_v16 = vmul.f32 0.5, %v147_v14 }
  0x8b   :  { %v149_v17 = vsel %vm1213_vm3, %v147_v14, %v148_v16  ;;  %v102_v36 = vpop.f32.mrf.mxu0 }
  0x8c   :  { %1035 = vtanh.f32 %v149_v17  ;;  %v103_v37 = vadd.f32 %v1210_v9, %v102_v36 }
  0x92   :  { %v1036_v18 = vpop.eup %1035 }
  0x93   :  { %v151_v19 = vmul.f32 0.5, %v1036_v18  ;;  %v105_v56 = vpop.f32.mrf.mxu0 }
  0x94   :  { %v106_v57 = vadd.f32 %v1210_v9, %v105_v56 }
  0x95   :  { %v152_v20 = vadd.f32 0.5, %v151_v19 }
  0x97   :  { %v153_v21 = vsel %vm1213_vm3, %v1036_v18, %v152_v20 }
  0x98   :  { %156 = vrot.lane.b32.xlu0 %v153_v21, %s1100_s3  ;;  %v154_v24 = vmul.f32 0.0, %v153_v21 }
  0x9b   :  { %v108_v14 = vpop.f32.mrf.mxu0 }
  0x9c   :  { %v109_v16 = vadd.f32 %v1210_v9, %v108_v14 }
 0x10a   :  { %v157_v22 = vpop.permute.xlu0 %156 }
 0x10b   :  { %v159_v23 = vmul.f32 %v157_v22, %v153_v21 }
 0x10d   :  { %161 = vrot.lane.b32.xlu0 %v159_v23, %s1101_s23 }
 0x17f   :  { %v162_v25 = vpop.permute.xlu0 %161 }
 0x180   :  { %v164_v26 = vadd.f32 %v162_v25, %v154_v24 }
 0x182   :  { %1037 = vtanh.f32 %v164_v26 }
 0x188   :  { %v1038_v27 = vpop.eup %1037 }
 0x189   :  { %167 = vrot.lane.b32.xlu1 %v1038_v27, %s1100_s3 }
 0x1fb   :  { %v168_v32 = vpop.permute.xlu1 %167 }
 0x1fc   :  { %v170_v33 = vmul.f32 %v168_v32, %v153_v21 }
 0x1fe   :  { %172 = vrot.lane.b32.xlu1 %v170_v33, %s1101_s23  ;;  %v43_v33 = vld [vmem:[%s1519_s0 + $0x20] sm:$0xff] }
 0x1ff   :  { %1002 = vmatmul.msk.f32.gmra.mxu0 %vm57_vm0, %v43_v33 }
 0x270   :  { %v173_v35 = vpop.permute.xlu1 %172 }
 0x271   :  { %1006 = vmatmul.msk.f32.vlgmr.msra.gmra.mxu2 %vm123_vm4, %v173_v35  ;;  %1013 = vmatmul.msk.f32.vlgmr.msra.gmra.mxu3 %vm123_vm4, %v173_v35 }
 0x272   :  { %335 = vmatpush.msra.mxu2 %v1155_v0 }
 0x274   :  { %336 = vmatpush.msra.mxu2 %v1163_v2 }
 0x276   :  { %337 = vmatpush.msra.mxu2 %v1175_v5 }
 0x278   :  { %338 = vmatpush.msra.mxu2 %v1183_v6 }
 0x27c   :  { %v111_v35 = vpop.f32.mrf.mxu0 }
 0x27d   :  { %v112_v36 = vadd.f32 %v1210_v9, %v111_v35 }
 0x2f4   :  { %v193_v38 = vpop.f32.mrf.mxu2 }
 0x2f5   :  { %v196_v39 = vadd.f32 %v193_v38, %v103_v37 }
 0x2f7   :  { %v197_v40 = vmul.f32 0.5, %v196_v39 }
 0x2f9   :  { %v198_v41 = vsel %vm1213_vm3, %v196_v39, %v197_v40 }
 0x2fa   :  { %1039 = vtanh.f32 %v198_v41 }
 0x300   :  { %v1040_v42 = vpop.eup %1039 }
 0x301   :  { %v200_v43 = vmul.f32 0.5, %v1040_v42 }
 0x303   :  { %v201_v44 = vadd.f32 0.5, %v200_v43 }
 0x305   :  { %v202_v45 = vsel %vm1213_vm3, %v1040_v42, %v201_v44 }
 0x306   :  { %205 = vrot.lane.b32.xlu2 %v202_v45, %s1100_s3  ;;  %v203_v48 = vmul.f32 %v202_v45, %v164_v26 }
 0x360   :  { %v206_v46 = vpop.permute.xlu2 %205 }
 0x361   :  { %v208_v47 = vmul.f32 %v206_v46, %v202_v45 }
 0x363   :  { %210 = vrot.lane.b32.xlu2 %v208_v47, %s1101_s23 }
 0x3bd   :  { %v211_v49 = vpop.permute.xlu2 %210 }
 0x3be   :  { %v213_v50 = vadd.f32 %v211_v49, %v203_v48 }
 0x3c0   :  { %1041 = vtanh.f32 %v213_v50 }
 0x3c6   :  { %v1042_v51 = vpop.eup %1041 }
 0x3c7   :  { %216 = vrot.lane.b32.xlu0 %v1042_v51, %s1100_s3  ;;  %v44_v51 = vld [vmem:[%s1519_s0 + $0x28] sm:$0xff] }
 0x3c8   :  { %1003 = vmatmul.msk.f32.gmra.mxu0 %vm57_vm0, %v44_v51 }
 0x439   :  { %v217_v52 = vpop.permute.xlu0 %216 }
 0x43a   :  { %v219_v53 = vmul.f32 %v217_v52, %v202_v45  ;;  %v45_v52 = vld [vmem:[%s1519_s0 + $0x30] sm:$0xff] }
 0x43b   :  { %1004 = vmatmul.msk.f32.gmra.mxu0 %vm57_vm0, %v45_v52 }
 0x43c   :  { %221 = vrot.lane.b32.xlu1 %v219_v53, %s1101_s23  ;;  %v46_v53 = vld [vmem:[%s1519_s0 + $0x38] sm:$0xff] }
 0x443   :  { %1005 = vmatmul.msk.f32.gmra.mxu0 %vm57_vm0, %v46_v53 }
 0x4ae   :  { %v222_v55 = vpop.permute.xlu1 %221 }
 0x4af   :  { %1007 = vmatmul.msk.f32.vlgmr.msrb.gmra.mxu2 %vm123_vm4, %v222_v55  ;;  %1014 = vmatmul.msk.f32.gmra.mxu3 %vm123_vm4, %v222_v55 }
 0x4b0   :  { %482 = vmatpush.msrb.mxu2 %v1155_v0 }
 0x4b2   :  { %483 = vmatpush.msrb.mxu2 %v1163_v2 }
 0x4b4   :  { %484 = vmatpush.msrb.mxu2 %v1175_v5 }
 0x4b6   :  { %485 = vmatpush.msrb.mxu2 %v1183_v6 }
 0x532   :  { %v242_v58 = vpop.f32.mrf.mxu2 }
 0x533   :  { %v245_v59 = vadd.f32 %v242_v58, %v106_v57  ;;  %v114_v57 = vpop.f32.mrf.mxu0 }
 0x535   :  { %v246_v60 = vmul.f32 0.5, %v245_v59 }
 0x537   :  { %v247_v61 = vsel %vm1213_vm3, %v245_v59, %v246_v60  ;;  %v115_v60 = vadd.f32 %v1210_v9, %v114_v57 }
 0x538   :  { %1043 = vtanh.f32 %v247_v61 }
 0x53b   :  { %v117_v58 = vpop.f32.mrf.mxu0 }
 0x53e   :  { %v1044_v62 = vpop.eup %1043 }
 0x53f   :  { %v249_v63 = vmul.f32 0.5, %v1044_v62 }
 0x541   :  { %v250_v1 = vadd.f32 0.5, %v249_v63 }
 0x543   :  { %v251_v0 = vsel %vm1213_vm3, %v1044_v62, %v250_v1  ;;  %v1319_v59 = vpop.f32.mrf.mxu0 }
 0x544   :  { %254 = vrot.lane.b32.xlu2 %v251_v0, %s1100_s3  ;;  %v252_v4 = vmul.f32 %v251_v0, %v213_v50 }
 0x59e   :  { %v255_v2 = vpop.permute.xlu2 %254 }
 0x59f   :  { %v257_v3 = vmul.f32 %v255_v2, %v251_v0 }
 0x5a1   :  { %259 = vrot.lane.b32.xlu0 %v257_v3, %s1101_s23 }
 0x613   :  { %v260_v5 = vpop.permute.xlu0 %259 }
 0x614   :  { %v262_v6 = vadd.f32 %v260_v5, %v252_v4 }
 0x616   :  { %1045 = vtanh.f32 %v262_v6 }
 0x61c   :  { %v1046_v8 = vpop.eup %1045 }
 0x61d   :  { %265 = vrot.lane.b32.xlu1 %v1046_v8, %s1100_s3 }
 0x68f   :  { %v266_v11 = vpop.permute.xlu1 %265 }
 0x690   :  { %v268_v12 = vmul.f32 %v266_v11, %v251_v0 }
 0x692   :  { %270 = vrot.lane.b32.xlu2 %v268_v12, %s1101_s23 }
 0x6ec   :  { %v271_v13 = vpop.permute.xlu2 %270 }
 0x6ed   :  { %1008 = vmatmul.msk.f32.vlgmr.msrb.gmra.mxu1 %vm123_vm4, %v271_v13  ;;  %1015 = vmatmul.msk.f32.gmra.mxu3 %vm123_vm4, %v271_v13 }
 0x76a   :  { %v291_v17 = vpop.f32.mrf.mxu1 }
 0x76b   :  { %v294_v18 = vadd.f32 %v291_v17, %v109_v16  ;;  %v1333_v16 = vld [vmem:[%s1523_s5 + $0x18] sm:$0xff]  ;;  %v1338_v17 = vld [vmem:[%s1523_s5 + $0x10] sm:$0xff] }
 0x76c   :  { %584 = vmatpush.msrb.mxu1 %v1333_v16 }
 0x76d   :  { %v295_v19 = vmul.f32 0.5, %v294_v18 }
 0x76e   :  { %585 = vmatpush.msrb.mxu1 %v1338_v17 }
 0x76f   :  { %v296_v20 = vsel %vm1213_vm3, %v294_v18, %v295_v19  ;;  %v1345_v18 = vld [vmem:[%s1523_s5 + $0x8] sm:$0xff]  ;;  %v1352_v19 = vld [vmem:[%s1523_s5] sm:$0xff] }
 0x770   :  { %1047 = vtanh.f32 %v296_v20  ;;  %586 = vmatpush.msrb.mxu1 %v1345_v18 }
 0x772   :  { %587 = vmatpush.msrb.mxu1 %v1352_v19 }
 0x776   :  { %v1048_v21 = vpop.eup %1047 }
 0x777   :  { %v298_v22 = vmul.f32 0.5, %v1048_v21 }
 0x779   :  { %v299_v23 = vadd.f32 0.5, %v298_v22 }
 0x77b   :  { %v300_v24 = vsel %vm1213_vm3, %v1048_v21, %v299_v23  ;;  %v118_v21 = vadd.f32 %v1210_v9, %v117_v58 }
 0x77c   :  { %303 = vrot.lane.b32.xlu0 %v300_v24, %s1100_s3  ;;  %v301_v27 = vmul.f32 %v300_v24, %v262_v6 }
 0x7ee   :  { %v304_v25 = vpop.permute.xlu0 %303 }
 0x7ef   :  { %v306_v26 = vmul.f32 %v304_v25, %v300_v24 }
 0x7f1   :  { %308 = vrot.lane.b32.xlu1 %v306_v26, %s1101_s23  ;;  %v548_v26 = vpop.f32.mrf.mxu3 }
 0x863   :  { %v309_v28 = vpop.permute.xlu1 %308 }
 0x864   :  { %v311_v29 = vadd.f32 %v309_v28, %v301_v27 }
 0x866   :  { %1049 = vtanh.f32 %v311_v29 }
 0x86c   :  { %v1050_v30 = vpop.eup %1049 }
 0x86d   :  { %314 = vrot.lane.b32.xlu2 %v1050_v30, %s1100_s3 }
 0x8c7   :  { %v315_v31 = vpop.permute.xlu2 %314 }
 0x8c8   :  { %v317_v32 = vmul.f32 %v315_v31, %v300_v24  ;;  %v1373_v24 = vld [vmem:[%s1522_s6] ss:$0 sm:$0xff] }
 0x8c9   :  { %v549_v27 = vadd.f32 %v1373_v24, %v548_v26 }
 0x8ca   :  { %319 = vrot.lane.b32.xlu0 %v317_v32, %s1101_s23 }
 0x93c   :  { %v320_v34 = vpop.permute.xlu0 %319 }
 0x93d   :  { %1009 = vmatmul.msk.f32.vlgmr.msra.gmra.mxu2 %vm123_vm4, %v320_v34  ;;  %1016 = vmatmul.msk.f32.gmra.mxu3 %vm123_vm4, %v320_v34 }
 0x93e   :  { %633 = vmatpush.msra.mxu2 %v1333_v16 }
 0x940   :  { %634 = vmatpush.msra.mxu2 %v1338_v17 }
 0x942   :  { %635 = vmatpush.msra.mxu2 %v1345_v18 }
 0x944   :  { %636 = vmatpush.msra.mxu2 %v1352_v19 }
 0x9c0   :  { %v340_v37 = vpop.f32.mrf.mxu2 }
 0x9c1   :  { %v343_v38 = vadd.f32 %v340_v37, %v112_v36 }
 0x9c3   :  { %v344_v39 = vmul.f32 0.5, %v343_v38 }
 0x9c5   :  { %v345_v40 = vsel %vm1213_vm3, %v343_v38, %v344_v39 }
 0x9c6   :  { %1051 = vtanh.f32 %v345_v40 }
 0x9cc   :  { %v1052_v41 = vpop.eup %1051 }
 0x9cd   :  { %v347_v42 = vmul.f32 0.5, %v1052_v41 }
 0x9cf   :  { %v348_v43 = vadd.f32 0.5, %v347_v42 }
 0x9d1   :  { %v349_v44 = vsel %vm1213_vm3, %v1052_v41, %v348_v43 }
 0x9d2   :  { %352 = vrot.lane.b32.xlu1 %v349_v44, %s1100_s3  ;;  %v350_v47 = vmul.f32 %v349_v44, %v311_v29 }
 0xa44   :  { %v353_v45 = vpop.permute.xlu1 %352 }
 0xa45   :  { %v355_v46 = vmul.f32 %v353_v45, %v349_v44 }
 0xa47   :  { %357 = vrot.lane.b32.xlu2 %v355_v46, %s1101_s23 }
 0xaa1   :  { %v358_v48 = vpop.permute.xlu2 %357 }
 0xaa2   :  { %v360_v49 = vadd.f32 %v358_v48, %v350_v47 }
 0xaa4   :  { %1053 = vtanh.f32 %v360_v49 }
 0xaaa   :  { %v1054_v50 = vpop.eup %1053 }
 0xaab   :  { %363 = vrot.lane.b32.xlu0 %v1054_v50, %s1100_s3 }
 0xb1d   :  { %v364_v54 = vpop.permute.xlu0 %363 }
 0xb1e   :  { %v366_v55 = vmul.f32 %v364_v54, %v349_v44 }
 0xb20   :  { %368 = vrot.lane.b32.xlu1 %v366_v55, %s1101_s23 }
 0xb92   :  { %v369_v56 = vpop.permute.xlu1 %368 }
 0xb93   :  { %1010 = vmatmul.msk.f32.vlgmr.msrb.gmra.mxu0 %vm123_vm4, %v369_v56  ;;  %1017 = vmatmul.msk.f32.gmra.mxu3 %vm123_vm4, %v369_v56 }
 0xc10   :  { %v389_v61 = vpop.f32.mrf.mxu0 }
 0xc11   :  { %v392_v62 = vadd.f32 %v389_v61, %v115_v60  ;;  %v551_v60 = vpop.f32.mrf.mxu3 }
 0xc12   :  { %v552_v61 = vadd.f32 %v1373_v24, %v551_v60 }
 0xc13   :  { %v393_v63 = vmul.f32 0.5, %v392_v62 }
 0xc15   :  { %v394_v1 = vsel %vm1213_vm3, %v392_v62, %v393_v63 }
 0xc16   :  { %1055 = vtanh.f32 %v394_v1 }
 0xc1c   :  { %v1056_v0 = vpop.eup %1055 }
 0xc1d   :  { %v396_v2 = vmul.f32 0.5, %v1056_v0 }
 0xc1f   :  { %v397_v3 = vadd.f32 0.5, %v396_v2 }
 0xc21   :  { %v398_v4 = vsel %vm1213_vm3, %v1056_v0, %v397_v3 }
 0xc22   :  { %401 = vrot.lane.b32.xlu2 %v398_v4, %s1100_s3  ;;  %v399_v8 = vmul.f32 %v398_v4, %v360_v49 }
 0xc7c   :  { %v402_v5 = vpop.permute.xlu2 %401 }
 0xc7d   :  { %v404_v6 = vmul.f32 %v402_v5, %v398_v4 }
 0xc7f   :  { %406 = vrot.lane.b32.xlu0 %v404_v6, %s1101_s23 }
 0xcf1   :  { %v407_v10 = vpop.permute.xlu0 %406 }
 0xcf2   :  { %v409_v11 = vadd.f32 %v407_v10, %v399_v8 }
 0xcf4   :  { %1057 = vtanh.f32 %v409_v11 }
 0xcfa   :  { %v1058_v12 = vpop.eup %1057 }
 0xcfb   :  { %412 = vrot.lane.b32.xlu1 %v1058_v12, %s1100_s3 }
 0xd6d   :  { %v413_v13 = vpop.permute.xlu1 %412 }
 0xd6e   :  { %v415_v14 = vmul.f32 %v413_v13, %v398_v4 }
 0xd70   :  { %417 = vrot.lane.b32.xlu2 %v415_v14, %s1101_s23 }
 0xdca   :  { %v418_v20 = vpop.permute.xlu2 %417 }
 0xdcb   :  { %1011 = vmatmul.msk.f32.vlgmr.msra.gmra.mxu1 %vm123_vm4, %v418_v20  ;;  %1018 = vmatmul.msk.f32.gmra.mxu3 %vm123_vm4, %v418_v20 }
 0xdcc   :  { %682 = vmatpush.msra.mxu1 %v1333_v16 }
 0xdce   :  { %683 = vmatpush.msra.mxu1 %v1338_v17 }
 0xdd0   :  { %684 = vmatpush.msra.mxu1 %v1345_v18 }
 0xdd2   :  { %685 = vmatpush.msra.mxu1 %v1352_v19 }
 0xdd3   :  { %588 = vmatmul.f32.vlgmr.msrb.gmra.mxu1 %v1099_v7 }
 0xdd4   :  { %780 = vmatpush.msrb.mxu1 %v1333_v16 }
 0xdd6   :  { %781 = vmatpush.msrb.mxu1 %v1338_v17 }
 0xdd8   :  { %782 = vmatpush.msrb.mxu1 %v1345_v18 }
 0xdda   :  { %783 = vmatpush.msrb.mxu1 %v1352_v19 }
 0xe48   :  { %v438_v22 = vpop.f32.mrf.mxu1 }
 0xe49   :  { %v441_v23 = vadd.f32 %v438_v22, %v118_v21  ;;  %v554_v22 = vpop.f32.mrf.mxu3 }
 0xe4b   :  { %v442_v25 = vmul.f32 0.5, %v441_v23 }
 0xe4d   :  { %v443_v7 = vsel %vm1213_vm3, %v441_v23, %v442_v25  ;;  %v555_v23 = vadd.f32 %v1373_v24, %v554_v22 }
 0xe4e   :  { %1059 = vtanh.f32 %v443_v7 }
 0xe50   :  { %v589_v28 = vpop.f32.mrf.mxu1 }
 0xe51   :  { %v592_v29 = vadd.f32 %v589_v28, %v549_v27 }
 0xe53   :  { %v593_v30 = vmul.f32 0.5, %v592_v29 }
 0xe54   :  { %v1060_v31 = vpop.eup %1059 }
 0xe55   :  { %v594_v32 = vsel %vm1213_vm3, %v592_v29, %v593_v30  ;;  %v445_v33 = vmul.f32 0.5, %v1060_v31 }
 0xe56   :  { %1061 = vtanh.f32 %v594_v32 }
 0xe57   :  { %v446_v34 = vadd.f32 0.5, %v445_v33 }
 0xe59   :  { %v447_v35 = vsel %vm1213_vm3, %v1060_v31, %v446_v34 }
 0xe5a   :  { %450 = vrot.lane.b32.xlu0 %v447_v35, %s1100_s3  ;;  %v448_v44 = vmul.f32 %v447_v35, %v409_v11 }
 0xe5c   :  { %v1062_v36 = vpop.eup %1061 }
 0xe5d   :  { %v596_v37 = vmul.f32 0.5, %v1062_v36 }
 0xe5f   :  { %v597_v38 = vadd.f32 0.5, %v596_v37 }
 0xe61   :  { %v598_v39 = vsel %vm1213_vm3, %v1062_v36, %v597_v38 }
 0xe62   :  { %601 = vrot.lane.b32.xlu1 %v598_v39, %s1100_s3  ;;  %v599_v48 = vmul.f32 0.0, %v598_v39 }
 0xecc   :  { %v451_v40 = vpop.permute.xlu0 %450 }
 0xecd   :  { %v453_v41 = vmul.f32 %v451_v40, %v447_v35 }
 0xecf   :  { %455 = vrot.lane.b32.xlu2 %v453_v41, %s1101_s23  ;;  %v557_v41 = vpop.f32.mrf.mxu3 }
 0xed4   :  { %v602_v42 = vpop.permute.xlu1 %601 }
 0xed5   :  { %v604_v43 = vmul.f32 %v602_v42, %v598_v39  ;;  %v558_v42 = vadd.f32 %v1373_v24, %v557_v41 }
 0xed7   :  { %606 = vrot.lane.b32.xlu0 %v604_v43, %s1101_s23 }
 0xf29   :  { %v456_v45 = vpop.permute.xlu2 %455 }
 0xf2a   :  { %v1388_v46 = vadd.f32 %v456_v45, %v448_v44 }
 0xf2c   :  { %1063 = vtanh.f32 %v1388_v46 }
 0xf32   :  { %v1064_v47 = vpop.eup %1063 }
 0xf33   :  { %461 = vrot.lane.b32.xlu1 %v1064_v47, %s1100_s3 }
 0xf49   :  { %v607_v49 = vpop.permute.xlu0 %606 }
 0xf4a   :  { %v609_v50 = vadd.f32 %v607_v49, %v599_v48 }
 0xf4c   :  { %1065 = vtanh.f32 %v609_v50 }
 0xf52   :  { %v1066_v51 = vpop.eup %1065 }
 0xf53   :  { %612 = vrot.lane.b32.xlu2 %v1066_v51, %s1100_s3 }
 0xfa5   :  { %v462_v52 = vpop.permute.xlu1 %461 }
 0xfa6   :  { %v464_v53 = vmul.f32 %v462_v52, %v447_v35 }
 0xfa8   :  { %466 = vrot.lane.b32.xlu0 %v464_v53, %s1101_s23 }
 0xfad   :  { %v613_v54 = vpop.permute.xlu2 %612 }
 0xfae   :  { %v615_v55 = vmul.f32 %v613_v54, %v598_v39 }
 0xfb0   :  { %617 = vrot.lane.b32.xlu1 %v615_v55, %s1101_s23 }
0x101a   :  { %v467_v56 = vpop.permute.xlu0 %466 }
0x101b   :  { %1012 = vmatmul.msk.f32.vlgmr.msrb.gmra.mxu2 %vm123_vm4, %v467_v56  ;;  %1019 = vmatmul.msk.f32.gmra.mxu3 %vm123_vm4, %v467_v56 }
0x101c   :  { %731 = vmatpush.msrb.mxu2 %v1333_v16 }
0x101e   :  { %732 = vmatpush.msrb.mxu2 %v1338_v17 }
0x1020   :  { %733 = vmatpush.msrb.mxu2 %v1345_v18 }
0x1022   :  { %v618_v57 = vpop.permute.xlu1 %617  ;;  %734 = vmatpush.msrb.mxu2 %v1352_v19 }
0x1023   :  { %1021 = vmatmul.msk.f32.vlgmr.msra.gmra.mxu2 %vm123_vm4, %v618_v57  ;;  %v560_v57 = vpop.f32.mrf.mxu3 }
0x1024   :  { %829 = vmatpush.msra.mxu2 %v1333_v16  ;;  %v561_v60 = vadd.f32 %v1373_v24, %v560_v57 }
0x1026   :  { %830 = vmatpush.msra.mxu2 %v1338_v17 }
0x1028   :  { %831 = vmatpush.msra.mxu2 %v1345_v18 }
0x102a   :  { %832 = vmatpush.msra.mxu2 %v1352_v19 }
0x109e   :  { %v1406_v58 = vpop.f32.mrf.mxu2 }
0x10a6   :  { %v638_v62 = vpop.f32.mrf.mxu2 }
0x10a7   :  { %v641_v63 = vadd.f32 %v638_v62, %v552_v61 }
0x10a9   :  { %v642_v1 = vmul.f32 0.5, %v641_v63 }
0x10ab   :  { %v643_v0 = vsel %vm1213_vm3, %v641_v63, %v642_v1 }
0x10ac   :  { %1067 = vtanh.f32 %v643_v0 }
0x10b2   :  { %v1068_v2 = vpop.eup %1067 }
0x10b3   :  { %v645_v3 = vmul.f32 0.5, %v1068_v2 }
0x10b5   :  { %v646_v4 = vadd.f32 0.5, %v645_v3 }
0x10b7   :  { %v647_v5 = vsel %vm1213_vm3, %v1068_v2, %v646_v4 }
0x10b8   :  { %650 = vrot.lane.b32.xlu2 %v647_v5, %s1100_s3  ;;  %v648_v10 = vmul.f32 %v647_v5, %v609_v50 }
0x1112   :  { %v651_v6 = vpop.permute.xlu2 %650 }
0x1113   :  { %v653_v8 = vmul.f32 %v651_v6, %v647_v5 }
0x1115   :  { %655 = vrot.lane.b32.xlu0 %v653_v8, %s1101_s23 }
0x1187   :  { %v656_v11 = vpop.permute.xlu0 %655 }
0x1188   :  { %v658_v12 = vadd.f32 %v656_v11, %v648_v10 }
0x118a   :  { %1069 = vtanh.f32 %v658_v12 }
0x1190   :  { %v1070_v13 = vpop.eup %1069 }
0x1191   :  { %661 = vrot.lane.b32.xlu1 %v1070_v13, %s1100_s3 }
0x1203   :  { %v662_v14 = vpop.permute.xlu1 %661 }
0x1204   :  { %v664_v20 = vmul.f32 %v662_v14, %v647_v5 }
0x1206   :  { %666 = vrot.lane.b32.xlu2 %v664_v20, %s1101_s23 }
0x1260   :  { %v667_v21 = vpop.permute.xlu2 %666 }
0x1261   :  { %1022 = vmatmul.msk.f32.vlgmr.msra.gmra.mxu1 %vm123_vm4, %v667_v21  ;;  %v563_v21 = vpop.f32.mrf.mxu3 }
0x1262   :  { %878 = vmatpush.msra.mxu1 %v1333_v16  ;;  %v564_v22 = vadd.f32 %v1373_v24, %v563_v21 }
0x1264   :  { %879 = vmatpush.msra.mxu1 %v1338_v17 }
0x1266   :  { %880 = vmatpush.msra.mxu1 %v1345_v18 }
0x1268   :  { %881 = vmatpush.msra.mxu1 %v1352_v19 }
0x12de   :  { %v687_v25 = vpop.f32.mrf.mxu1 }
0x12df   :  { %v690_v26 = vadd.f32 %v687_v25, %v555_v23 }
0x12e1   :  { %v691_v7 = vmul.f32 0.5, %v690_v26 }
0x12e3   :  { %v692_v27 = vsel %vm1213_vm3, %v690_v26, %v691_v7 }
0x12e4   :  { %1071 = vtanh.f32 %v692_v27 }
0x12ea   :  { %v1072_v28 = vpop.eup %1071 }
0x12eb   :  { %v694_v29 = vmul.f32 0.5, %v1072_v28 }
0x12ed   :  { %v695_v30 = vadd.f32 0.5, %v694_v29 }
0x12ef   :  { %v696_v31 = vsel %vm1213_vm3, %v1072_v28, %v695_v30 }
0x12f0   :  { %699 = vrot.lane.b32.xlu0 %v696_v31, %s1100_s3  ;;  %v697_v34 = vmul.f32 %v696_v31, %v658_v12 }
0x1362   :  { %v700_v32 = vpop.permute.xlu0 %699 }
0x1363   :  { %v702_v33 = vmul.f32 %v700_v32, %v696_v31 }
0x1365   :  { %704 = vrot.lane.b32.xlu1 %v702_v33, %s1101_s23 }
0x13d7   :  { %v705_v35 = vpop.permute.xlu1 %704 }
0x13d8   :  { %v707_v36 = vadd.f32 %v705_v35, %v697_v34 }
0x13da   :  { %1073 = vtanh.f32 %v707_v36 }
0x13e0   :  { %v1074_v37 = vpop.eup %1073 }
0x13e1   :  { %710 = vrot.lane.b32.xlu2 %v1074_v37, %s1100_s3 }
0x143b   :  { %v711_v38 = vpop.permute.xlu2 %710 }
0x143c   :  { %v713_v39 = vmul.f32 %v711_v38, %v696_v31  ;;  %v121_v31 = vadd.f32 %v1210_v9, %v1319_v59 }
0x143e   :  { %715 = vrot.lane.b32.xlu0 %v713_v39, %s1101_s23  ;;  %v490_v32 = vadd.f32 %v1406_v58, %v121_v31  ;;  %v959_v31 = vld [vmem:[%s1524_s7] sm:$0xff] }
0x1440   :  { %v491_v33 = vmul.f32 0.5, %v490_v32 }
0x1442   :  { %v492_v34 = vsel %vm1213_vm3, %v490_v32, %v491_v33 }
0x14b0   :  { %v716_v40 = vpop.permute.xlu0 %715 }
0x14b1   :  { %1023 = vmatmul.msk.f32.vlgmr.msrb.gmra.mxu2 %vm123_vm4, %v716_v40 }
0x14b2   :  { %927 = vmatpush.msrb.mxu2 %v1333_v16 }
0x14b4   :  { %928 = vmatpush.msrb.mxu2 %v1338_v17 }
0x14b6   :  { %929 = vmatpush.msrb.mxu2 %v1345_v18 }
0x14b8   :  { %930 = vmatpush.msrb.mxu2 %v1352_v19 }
0x1534   :  { %v736_v43 = vpop.f32.mrf.mxu2 }
0x1535   :  { %v739_v44 = vadd.f32 %v736_v43, %v558_v42 }
0x1537   :  { %v740_v45 = vmul.f32 0.5, %v739_v44 }
0x1539   :  { %v741_v47 = vsel %vm1213_vm3, %v739_v44, %v740_v45 }
0x153a   :  { %1075 = vtanh.f32 %v741_v47 }
0x1540   :  { %v1076_v48 = vpop.eup %1075 }
0x1541   :  { %v743_v49 = vmul.f32 0.5, %v1076_v48 }
0x1543   :  { %v744_v50 = vadd.f32 0.5, %v743_v49 }
0x1545   :  { %v745_v16 = vsel %vm1213_vm3, %v1076_v48, %v744_v50  ;;  %v566_v48 = vpop.f32.mrf.mxu3 }
0x1546   :  { %748 = vrot.lane.b32.xlu1 %v745_v16, %s1100_s3  ;;  %v746_v19 = vmul.f32 %v745_v16, %v707_v36  ;;  %v567_v49 = vadd.f32 %v1373_v24, %v566_v48 }
0x15b8   :  { %v749_v17 = vpop.permute.xlu1 %748 }
0x15b9   :  { %v751_v18 = vmul.f32 %v749_v17, %v745_v16 }
0x15bb   :  { %753 = vrot.lane.b32.xlu2 %v751_v18, %s1101_s23 }
0x1615   :  { %v754_v51 = vpop.permute.xlu2 %753 }
0x1616   :  { %v756_v52 = vadd.f32 %v754_v51, %v746_v19 }
0x1618   :  { %1077 = vtanh.f32 %v756_v52 }
0x161e   :  { %v1078_v53 = vpop.eup %1077 }
0x161f   :  { %759 = vrot.lane.b32.xlu0 %v1078_v53, %s1100_s3 }
0x1691   :  { %v760_v54 = vpop.permute.xlu0 %759 }
0x1692   :  { %v762_v55 = vmul.f32 %v760_v54, %v745_v16 }
0x1694   :  { %764 = vrot.lane.b32.xlu1 %v762_v55, %s1101_s23 }
0x1706   :  { %v765_v56 = vpop.permute.xlu1 %764 }
0x1707   :  { %1024 = vmatmul.msk.f32.vlgmr.msrb.gmra.mxu1 %vm123_vm4, %v765_v56 }
0x1784   :  { %v785_v61 = vpop.f32.mrf.mxu1 }
0x1785   :  { %v788_v62 = vadd.f32 %v785_v61, %v561_v60 }
0x1787   :  { %v789_v63 = vmul.f32 0.5, %v788_v62 }
0x1789   :  { %v790_v1 = vsel %vm1213_vm3, %v788_v62, %v789_v63 }
0x178a   :  { %1079 = vtanh.f32 %v790_v1 }
0x1790   :  { %v1080_v0 = vpop.eup %1079 }
0x1791   :  { %v792_v2 = vmul.f32 0.5, %v1080_v0 }
0x1793   :  { %v793_v3 = vadd.f32 0.5, %v792_v2 }
0x1795   :  { %v794_v4 = vsel %vm1213_vm3, %v1080_v0, %v793_v3 }
0x1796   :  { %797 = vrot.lane.b32.xlu2 %v794_v4, %s1100_s3  ;;  %v795_v8 = vmul.f32 %v794_v4, %v756_v52 }
0x17f0   :  { %v798_v5 = vpop.permute.xlu2 %797 }
0x17f1   :  { %v800_v6 = vmul.f32 %v798_v5, %v794_v4 }
0x17f3   :  { %802 = vrot.lane.b32.xlu0 %v800_v6, %s1101_s23 }
0x1865   :  { %v803_v10 = vpop.permute.xlu0 %802 }
0x1866   :  { %v805_v11 = vadd.f32 %v803_v10, %v795_v8 }
0x1868   :  { %1081 = vtanh.f32 %v805_v11 }
0x186e   :  { %v1082_v12 = vpop.eup %1081 }
0x186f   :  { %808 = vrot.lane.b32.xlu1 %v1082_v12, %s1100_s3 }
0x18e1   :  { %v809_v13 = vpop.permute.xlu1 %808 }
0x18e2   :  { %v811_v14 = vmul.f32 %v809_v13, %v794_v4 }
0x18e4   :  { %813 = vrot.lane.b32.xlu2 %v811_v14, %s1101_s23 }
0x193e   :  { %v814_v20 = vpop.permute.xlu2 %813 }
0x193f   :  { %1025 = vmatmul.msk.f32.vlgmr.msra.gmra.mxu2 %vm123_vm4, %v814_v20 }
0x19c2   :  { %v834_v23 = vpop.f32.mrf.mxu2 }
0x19c3   :  { %v837_v25 = vadd.f32 %v834_v23, %v564_v22 }
0x19c5   :  { %v838_v26 = vmul.f32 0.5, %v837_v25 }
0x19c7   :  { %v839_v7 = vsel %vm1213_vm3, %v837_v25, %v838_v26 }
0x19c8   :  { %1083 = vtanh.f32 %v839_v7 }
0x19c9   :  { %1085 = vtanh.f32 %v492_v34  ;;  %v14_v34 = vstv %s1525_s8 }
0x19ca   :  { %15 = vst [vmem:[#allocation2] sm:$0x1] %v14_v34 }
0x19ce   :  { %v1084_v27 = vpop.eup %1083 }
0x19cf   :  { %v841_v28 = vmul.f32 0.5, %v1084_v27  ;;  %v1086_v35 = vpop.eup %1085 }
0x19d0   :  { %v494_v38 = vmul.f32 0.5, %v1086_v35 }
0x19d1   :  { %v842_v29 = vadd.f32 0.5, %v841_v28 }
0x19d2   :  { %v495_v39 = vadd.f32 0.5, %v494_v38 }
0x19d3   :  { %v843_v30 = vsel %vm1213_vm3, %v1084_v27, %v842_v29  ;;  %v962_v29 = vld [vmem:[%s1524_s7 + $0x18] sm:$0xff] }
0x19d4   :  { %846 = vrot.lane.b32.xlu0 %v843_v30, %s1100_s3  ;;  %v496_v40 = vsel %vm1213_vm3, %v1086_v35, %v495_v39  ;;  %v844_v9 = vmul.f32 %v843_v30, %v805_v11  ;;  %984 = vmatpush.msrb.mxu1 %v962_v29 }
0x19d5   :  { %v497_v52 = vmul.f32 %v496_v40, %v1388_v46 }
0x19d6   :  { %985 = vmatpush.msrb.mxu1 %v961_v15 }
0x1a46   :  { %v847_v36 = vpop.permute.xlu0 %846 }
0x1a47   :  { %v849_v37 = vmul.f32 %v847_v36, %v843_v30  ;;  %v1034_v36 = vld [vmem:[#allocation2] ss:$0 sm:$0xff] }
0x1a49   :  { %851 = vrot.lane.b32.xlu1 %v849_v37, %s1101_s23 }
0x1a51   :  { %499 = vrot.lane.b32.xlu1 %v496_v40, %s1100_s3 }
0x1abb   :  { %v852_v59 = vpop.permute.xlu1 %851 }
0x1abc   :  { %v854_v58 = vadd.f32 %v852_v59, %v844_v9 }
0x1abe   :  { %1087 = vtanh.f32 %v854_v58 }
0x1ac3   :  { %v500_v44 = vpop.permute.xlu1 %499 }
0x1ac4   :  { %v1088_v41 = vpop.eup %1087  ;;  %v502_v45 = vmul.f32 %v500_v44, %v496_v40 }
0x1ac5   :  { %857 = vrot.lane.b32.xlu2 %v1088_v41, %s1100_s3 }
0x1b1f   :  { %v858_v42 = vpop.permute.xlu2 %857 }
0x1b20   :  { %v860_v43 = vmul.f32 %v858_v42, %v843_v30  ;;  %v960_v30 = vld [vmem:[%s1524_s7 + $0x8] sm:$0xff] }
0x1b21   :  { %986 = vmatpush.msrb.mxu1 %v960_v30 }
0x1b22   :  { %862 = vrot.lane.b32.xlu0 %v860_v43, %s1101_s23 }
0x1b23   :  { %987 = vmatpush.msrb.mxu1 %v959_v31 }
0x1b2a   :  { %504 = vrot.lane.b32.xlu0 %v502_v45, %s1101_s23 }
0x1b94   :  { %v863_v47 = vpop.permute.xlu0 %862 }
0x1b95   :  { %1026 = vmatmul.msk.f32.vlgmr.msra.gmra.mxu1 %vm123_vm4, %v863_v47 }
0x1b9c   :  { %v505_v51 = vpop.permute.xlu0 %504 }
0x1b9d   :  { %v507_v54 = vadd.f32 %v505_v51, %v497_v52 }
0x1c12   :  { %v883_v50 = vpop.f32.mrf.mxu1 }
0x1c13   :  { %v886_v16 = vadd.f32 %v883_v50, %v567_v49 }
0x1c15   :  { %v887_v17 = vmul.f32 0.5, %v886_v16 }
0x1c17   :  { %v888_v18 = vsel %vm1213_vm3, %v886_v16, %v887_v17 }
0x1c18   :  { %1089 = vtanh.f32 %v888_v18 }
0x1c19   :  { %1091 = vtanh.f32 %v507_v54 }
0x1c1e   :  { %v1090_v19 = vpop.eup %1089 }
0x1c1f   :  { %v890_v53 = vmul.f32 0.5, %v1090_v19  ;;  %v1092_v57 = vpop.eup %1091 }
0x1c21   :  { %v891_v55 = vadd.f32 0.5, %v890_v53 }
0x1c23   :  { %v892_v56 = vsel %vm1213_vm3, %v1090_v19, %v891_v55 }
0x1c24   :  { %895 = vrot.lane.b32.xlu2 %v892_v56, %s1100_s3  ;;  %v893_v46 = vmul.f32 %v892_v56, %v854_v58 }
0x1c2c   :  { %510 = vrot.lane.b32.xlu2 %v1092_v57, %s1100_s3 }
0x1c7e   :  { %v896_v60 = vpop.permute.xlu2 %895 }
0x1c7f   :  { %v898_v61 = vmul.f32 %v896_v60, %v892_v56 }
0x1c81   :  { %900 = vrot.lane.b32.xlu1 %v898_v61, %s1101_s23 }
0x1c86   :  { %v511_v62 = vpop.permute.xlu2 %510 }
0x1c87   :  { %v513_v63 = vmul.f32 %v511_v62, %v496_v40 }
0x1c89   :  { %527 = vrot.lane.b32.xlu1 %v513_v63, %s1101_s23 }
0x1cf3   :  { %v901_v1 = vpop.permute.xlu1 %900 }
0x1cf4   :  { %v903_v0 = vadd.f32 %v901_v1, %v893_v46 }
0x1cf6   :  { %1093 = vtanh.f32 %v903_v0 }
0x1cfb   :  { %v528_v2 = vpop.permute.xlu1 %527 }
0x1cfc   :  { %v1094_v3 = vpop.eup %1093  ;;  %1020 = vmatmul.msk.f32.gmra.mxu3 %vm123_vm4, %v528_v2 }
0x1cfd   :  { %906 = vrot.lane.b32.xlu0 %v1094_v3, %s1100_s3 }
0x1d6f   :  { %v907_v4 = vpop.permute.xlu0 %906 }
0x1d70   :  { %v909_v5 = vmul.f32 %v907_v4, %v892_v56 }
0x1d72   :  { %911 = vrot.lane.b32.xlu2 %v909_v5, %s1101_s23 }
0x1d7f   :  { %v569_v8 = vpop.f32.mrf.mxu3 }
0x1d80   :  { %v570_v10 = vadd.f32 %v1373_v24, %v569_v8 }
0x1dcc   :  { %v912_v6 = vpop.permute.xlu2 %911 }
0x1dcd   :  { %1027 = vmatmul.msk.f32.vlgmr.msrb.gmra.mxu2 %vm123_vm4, %v912_v6 }
0x1e50   :  { %v932_v11 = vpop.f32.mrf.mxu2 }
0x1e51   :  { %v935_v12 = vadd.f32 %v932_v11, %v570_v10 }
0x1e53   :  { %v936_v13 = vmul.f32 0.5, %v935_v12 }
0x1e55   :  { %v937_v14 = vsel %vm1213_vm3, %v935_v12, %v936_v13 }
0x1e56   :  { %1095 = vtanh.f32 %v937_v14 }
0x1e5c   :  { %v1096_v20 = vpop.eup %1095 }
0x1e5d   :  { %v939_v21 = vmul.f32 0.5, %v1096_v20 }
0x1e5f   :  { %v940_v22 = vadd.f32 0.5, %v939_v21 }
0x1e61   :  { %v941_v23 = vsel %vm1213_vm3, %v1096_v20, %v940_v22 }
0x1e62   :  { %944 = vrot.lane.b32.xlu0 %v941_v23, %s1100_s3  ;;  %v942_v24 = vmul.f32 %v941_v23, %v903_v0 }
0x1ed4   :  { %v945_v25 = vpop.permute.xlu0 %944 }
0x1ed5   :  { %v947_v26 = vmul.f32 %v945_v25, %v941_v23 }
0x1ed7   :  { %949 = vrot.lane.b32.xlu1 %v947_v26, %s1101_s23 }
0x1f49   :  { %v950_v7 = vpop.permute.xlu1 %949 }
0x1f4a   :  { %v952_v27 = vadd.f32 %v950_v7, %v942_v24 }
0x1f4c   :  { %1097 = vtanh.f32 %v952_v27 }
0x1f52   :  { %v1098_v28 = vpop.eup %1097 }
0x1f53   :  { %955 = vrot.lane.b32.xlu2 %v1098_v28, %s1100_s3 }
0x1fad   :  { %v956_v32 = vpop.permute.xlu2 %955 }
0x1fae   :  { %v958_v33 = vmul.f32 %v956_v32, %v941_v23 }
0x1fb0   :  { %968 = vrot.lane.b32.xlu0 %v958_v33, %s1101_s23 }
0x2022   :  { %v969_v35 = vpop.permute.xlu0 %968 }
0x2023   :  { %1028 = vmatmul.msk.f32.vlgmr.msrb.gmra.mxu1 %vm123_vm4, %v969_v35 }
0x20a0   :  { %v989_v37 = vpop.f32.mrf.mxu1 }
0x20a1   :  { %v990_v38 = vadd.f32 %v1034_v36, %v989_v37 }
0x20a3   :  { %993 = vst.msk [vmem:[%s1526_s9] sm:$0xff] %vm992_vm5, %v990_v38 }

</bundles_post_ra>
